<compile_context>
chip_gen: v7x
topology: tpu7x:2x2x1
jax: 0.10.0
libtpu: 0.0.40
codegen_flags: <defaults>
</compile_context>

<pallas_src>
import functools

import jax
import jax.numpy as jnp
from jax.experimental import pallas as pl
from jax.experimental.pallas import tpu as pltpu

# Tap order (kh, kw): centre tap first so the identity / 1x1-shortcut operand
# sits at lane offset 0 of the in-kernel patch buffer.
_TAP_ORDER = [(1, 1)] + [(kh, kw) for kh in range(3) for kw in range(3)
                         if (kh, kw) != (1, 1)]


def _resblock_kernel(x_ref, w1_ref, b1_ref, w2_ref, b2_ref, bs_ref,
                     o_ref, p1_ref, pad_ref, p2_ref, *,
                     nb, hout, wout, cin, cout, ds):
    """Fused ResBlock forward for a block of `nb` whole images.

    x_ref   : (nph^2, nb, hout+eh, wout+eh, cin)  phase-split padded input
    w1_ref  : (9*cin, cout or 2*cout)             conv1 (+ folded shortcut)
    w2_ref  : (9*cout, cout)                      conv2, tap-major rows
    o_ref   : (nb*S, cout)                        output block
    p1_ref  : (nb*S, 9*cin)    VMEM scratch       conv1 im2col
    pad_ref : (nb, hout+2, wout+2, cout) VMEM     padded conv1 activations
    p2_ref  : (nb*S, 9*cout)   VMEM scratch       conv2 im2col
    """
    s = hout * wout
    m = nb * s
    nph = min(ds, 3)
    cdtype = p1_ref.dtype

    # ---- conv1 im2col built in VMEM from the phase-split input block --------
    for idx, (kh, kw) in enumerate(_TAP_ORDER):
        ph = (kh % nph) * nph + (kw % nph)          # static phase index
        oh, ow = kh // nph, kw // nph               # static in-phase offset
        tap = x_ref[ph, :, oh:oh + hout, ow:ow + wout, :]
        p1_ref[:, idx * cin:(idx + 1) * cin] = tap.reshape(m, cin)

    # ---- conv1 (+ folded 1x1 shortcut): one GEMM, f32 accumulation ----------
    g1 = jnp.dot(p1_ref[...], w1_ref[...], preferred_element_type=jnp.float32)
    out1 = jnp.maximum(g1[:, :cout] + b1_ref[...], 0.0)

    # residual stashed in the output block (nothing large stays live past here)
    if ds > 1:
        o_ref[...] = (g1[:, cout:] + bs_ref[...]).astype(o_ref.dtype)
    else:
        # identity residual == centre tap (lane offset 0 by tap order)
        o_ref[...] = p1_ref[:, 0:cout].astype(o_ref.dtype)

    # ---- padded conv1 activations: single dense store (border via concat) ---
    a = out1.astype(cdtype).reshape(nb, hout, wout, cout)
    zh = jnp.zeros((nb, 1, wout, cout), cdtype)
    zw = jnp.zeros((nb, hout + 2, 1, cout), cdtype)
    a = jnp.concatenate([zh, a, zh], axis=1)
    a = jnp.concatenate([zw, a, zw], axis=2)
    pad_ref[...] = a

    # ---- conv2 im2col in VMEM, then ONE GEMM with K = 9*cout ----------------
    for idx, (kh, kw) in enumerate(_TAP_ORDER):
        tap = pad_ref[:, kh:kh + hout, kw:kw + wout, :]
        p2_ref[:, idx * cout:(idx + 1) * cout] = tap.reshape(m, cout)
    out2 = jnp.dot(p2_ref[...], w2_ref[...], preferred_element_type=jnp.float32)

    # ---- bias + residual add + final ReLU ------------------------------------
    o_ref[...] = jnp.maximum(
        out2 + b2_ref[...] + o_ref[...].astype(jnp.float32), 0.0
    ).astype(o_ref.dtype)


def resblock_pallas(x_nchw, params, in_channels, out_channels,
                    compute_dtype=jnp.bfloat16):
    w1, b1, w2, b2, ws, bs = params
    ds = out_channels // in_channels
    assert ds >= 1 and in_channels * ds == out_channels, (
        "ResBlock assumes out_channels is an integer multiple of in_channels")
    N, C, H, W = x_nchw.shape
    assert C == in_channels

    hout = (H - 1) // ds + 1          # k=3, pad=1, stride=ds
    wout = (W - 1) // ds + 1
    S = hout * wout
    nph = min(ds, 3)                  # distinct tap phases per spatial dim
    eh = 2 // ds                      # extra rows/cols needed per phase array
    He, We = hout + eh, wout + eh

    # ---- phase-split padded input (~1x input bytes, any stride) -------------
    x = jnp.transpose(x_nchw, (0, 2, 3, 1))                       # NHWC
    need_h = (nph - 1) + ds * (He - 1) + 1
    need_w = (nph - 1) + ds * (We - 1) + 1
    extra_h = max(0, need_h - (H + 2))
    extra_w = max(0, need_w - (W + 2))
    xp = jnp.pad(x, ((0, 0), (1, 1 + extra_h), (1, 1 + extra_w), (0, 0)))
    phases = []
    for ph in range(nph):
        for pw in range(nph):
            phases.append(xp[:, ph:ph + ds * (He - 1) + 1:ds,
                             pw:pw + ds * (We - 1) + 1:ds, :])
    x_phases = jnp.stack(phases, axis=0).astype(compute_dtype)    # (nph^2,N,He,We,C)

    # ---- weight flattening (tap-major rows, centre tap first) ---------------
    w1_t = jnp.transpose(w1, (2, 3, 1, 0))                        # (3,3,Cin,Cout)
    w1_flat = jnp.stack([w1_t[kh, kw] for kh, kw in _TAP_ORDER],
                        axis=0).reshape(9 * C, out_channels)
    if ds > 1:
        ws_mat = jnp.transpose(ws[:, :, 0, 0], (1, 0))            # (Cin,Cout)
        ws_ext = jnp.zeros((9 * C, out_channels), w1_flat.dtype).at[0:C].set(ws_mat)
        w1ws = jnp.concatenate([w1_flat, ws_ext], axis=1)         # (9*Cin, 2*Cout)
        bs_row = bs.reshape(1, out_channels).astype(jnp.float32)
    else:
        w1ws = w1_flat
        bs_row = jnp.zeros((1, out_channels), jnp.float32)
    cout_ext = w1ws.shape[1]
    w1ws = w1ws.astype(compute_dtype)

    w2_t = jnp.transpose(w2, (2, 3, 1, 0))                        # (3,3,Cout,Cout)
    w2_flat = jnp.stack([w2_t[kh, kw] for kh, kw in _TAP_ORDER],
                        axis=0).reshape(9 * out_channels, out_channels)
    w2_flat = w2_flat.astype(compute_dtype)

    b1r = b1.reshape(1, out_channels).astype(jnp.float32)
    b2r = b2.reshape(1, out_channels).astype(jnp.float32)

    # ---- tile selection: >=2 grid steps when possible, bounded VMEM ---------
    it = jnp.dtype(compute_dtype).itemsize
    out_it = jnp.dtype(x_nchw.dtype).itemsize

    def _step_bytes(nb_):
        m_ = nb_ * S
        b = 2 * (nph * nph) * nb_ * He * We * C * it          # input block (x2 buf)
        b += 2 * m_ * out_channels * out_it                   # output block (x2 buf)
        b += m_ * 9 * C * it                                  # p1 scratch
        b += nb_ * (hout + 2) * (wout + 2) * out_channels * it  # pad scratch
        b += m_ * 9 * out_channels * it                       # p2 scratch
        b += 2 * (w1ws.size + w2_flat.size) * it              # weights
        return b

    VMEM_BUDGET = 40 * 1024 * 1024     # headroom for v7x's 64 MiB VMEM
    nb = N                             # fallback: one full block (always lowers)
    for cand in range(max(N // 2, 1), 0, -1):
        if N % cand:
            continue
        if N // cand > 1 and (cand * S) % 8:      # non-full blocks: 8-aligned rows
            continue
        if _step_bytes(cand) > VMEM_BUDGET:
            continue
        nb = cand
        break
    M = nb * S
    grid = (N // nb,)

    kern = functools.partial(_resblock_kernel, nb=nb, hout=hout, wout=wout,
                             cin=C, cout=out_channels, ds=ds)

    flops = int(2 * N * S * (9 * C) * cout_ext                 # conv1 (+shortcut)
                + 2 * N * S * (9 * out_channels) * out_channels)  # conv2
    bytes_accessed = int(x_phases.size * it
                         + (w1ws.size + w2_flat.size) * it
                         + (b1r.size + b2r.size + bs_row.size) * 4
                         + N * S * out_channels * out_it)

    out = pl.pallas_call(
        kern,
        out_shape=jax.ShapeDtypeStruct((N * S, out_channels), x_nchw.dtype),
        grid_spec=pltpu.PrefetchScalarGridSpec(
            num_scalar_prefetch=0,
            grid=grid,
            in_specs=[
                pl.BlockSpec((nph * nph, nb, He, We, C),
                             lambda i: (0, i, 0, 0, 0)),
                pl.BlockSpec((9 * C, cout_ext), lambda i: (0, 0)),
                pl.BlockSpec((1, out_channels), lambda i: (0, 0)),
                pl.BlockSpec((9 * out_channels, out_channels),
                             lambda i: (0, 0)),
                pl.BlockSpec((1, out_channels), lambda i: (0, 0)),
                pl.BlockSpec((1, out_channels), lambda i: (0, 0)),
            ],
            out_specs=pl.BlockSpec((M, out_channels), lambda i: (i, 0)),
            scratch_shapes=[
                pltpu.VMEM((M, 9 * C), compute_dtype),
                pltpu.VMEM((nb, hout + 2, wout + 2, out_channels),
                           compute_dtype),
                pltpu.VMEM((M, 9 * out_channels), compute_dtype),
            ],
        ),
        compiler_params=pltpu.CompilerParams(
            dimension_semantics=("parallel",),
            vmem_limit_bytes=48 * 1024 * 1024),
        cost_estimate=pl.CostEstimate(flops=flops, transcendentals=0,
                                      bytes_accessed=bytes_accessed),
    )(x_phases, w1ws, b1r, w2_flat, b2r, bs_row)

    out = out.reshape(N, hout, wout, out_channels)
    return jnp.transpose(out, (0, 3, 1, 2))   # back to NCHW


# ------------------------- pure-JAX reference (NCHW) -------------------------
def _conv_ref(x, w, b, stride, padding):
    out = jax.lax.conv_general_dilated(
        x, w, window_strides=(stride, stride),
        padding=[(padding, padding), (padding, padding)],
        dimension_numbers=("NCHW", "OIHW", "NCHW"))
    return out + b[None, :, None, None]


def resblock_ref(x, params, in_ch, out_ch):
    w1, b1, w2, b2, ws, bs = params
    ds = out_ch // in_ch
    out = jnp.maximum(_conv_ref(x, w1, b1, ds, 1), 0.0)
    out = _conv_ref(out, w2, b2, 1, 1)
    res = _conv_ref(x, ws, bs, ds, 0) if ds > 1 else x
    return jnp.maximum(out + res, 0.0)


def _make_params(key, in_ch, out_ch):
    ks = jax.random.split(key, 6)

    def uinit(k, shape, fan_in):
        bound = 1.0 / (fan_in ** 0.5)
        return jax.random.uniform(k, shape, jnp.float32, -bound, bound)

    w1 = uinit(ks[0], (out_ch, in_ch, 3, 3), in_ch * 9)
    b1 = uinit(ks[1], (out_ch,), in_ch * 9)
    w2 = uinit(ks[2], (out_ch, out_ch, 3, 3), out_ch * 9)
    b2 = uinit(ks[3], (out_ch,), out_ch * 9)
    ws = uinit(ks[4], (out_ch, in_ch, 1, 1), in_ch)
    bs = uinit(ks[5], (out_ch,), in_ch)
    return (w1, b1, w2, b2, ws, bs)


if __name__ == "__main__":
    key = jax.random.PRNGKey(0)
    k_p1, k_p2, k_x1, k_x2 = jax.random.split(key, 4)

    # --- case 1: downsampling block (stride-2 conv1 + 1x1 shortcut conv) -----
    in_ch, out_ch, N, H, W = 4, 8, 2, 16, 16
    params = _make_params(k_p1, in_ch, out_ch)
    x = jax.random.normal(k_x1, (N, in_ch, H, W), jnp.float32)
    y_ref = resblock_ref(x, params, in_ch, out_ch)

    # exactness of the fused algorithm (f32 operands)
    y32 = jax.block_until_ready(
        resblock_pallas(x, params, in_ch, out_ch, compute_dtype=jnp.float32))
    assert y32.shape == y_ref.shape == (N, out_ch, H // 2, W // 2)
    assert jnp.allclose(y32, y_ref, atol=1e-4, rtol=1e-4)

    # fast path: bf16 MXU operands, f32 accumulation (relaxed tolerance)
    ybf = jax.block_until_ready(
        resblock_pallas(x, params, in_ch, out_ch, compute_dtype=jnp.bfloat16))
    assert jnp.allclose(ybf, y_ref, atol=1e-1, rtol=1e-2)

    # --- case 2: identity block (stride 1, residual = x) ---------------------
    in_ch2 = out_ch2 = 8
    H2 = W2 = 8
    params2 = _make_params(k_p2, in_ch2, out_ch2)
    x2 = jax.random.normal(k_x2, (N, in_ch2, H2, W2), jnp.float32)
    y2_ref = resblock_ref(x2, params2, in_ch2, out_ch2)

    y2_32 = jax.block_until_ready(
        resblock_pallas(x2, params2, in_ch2, out_ch2,
                        compute_dtype=jnp.float32))
    assert y2_32.shape == y2_ref.shape == (N, out_ch2, H2, W2)
    assert jnp.allclose(y2_32, y2_ref, atol=1e-4, rtol=1e-4)

    y2_bf = jax.block_until_ready(
        resblock_pallas(x2, params2, in_ch2, out_ch2,
                        compute_dtype=jnp.bfloat16))
    assert jnp.allclose(y2_bf, y2_ref, atol=1e-1, rtol=1e-2)

    print("KERNEL_OK")
</pallas_src>

<mosaic_0001>
module attributes {stable_mosaic.version = 11 : i64} {
  func.func @_resblock_kernel(%arg0: i32, %arg1: memref<4x1x9x9x4xf32, #tpu.memory_space<vmem>>, %arg2: memref<36x16xf32, #tpu.memory_space<vmem>>, %arg3: memref<1x8xf32, #tpu.memory_space<vmem>>, %arg4: memref<72x8xf32, #tpu.memory_space<vmem>>, %arg5: memref<1x8xf32, #tpu.memory_space<vmem>>, %arg6: memref<1x8xf32, #tpu.memory_space<vmem>>, %arg7: memref<64x8xf32, #tpu.memory_space<vmem>>, %arg8: memref<64x36xf32, #tpu.memory_space<vmem>>, %arg9: memref<1x10x10x8xf32, #tpu.memory_space<vmem>>, %arg10: memref<64x72xf32, #tpu.memory_space<vmem>>) attributes {dimension_semantics = [#tpu.dimension_semantics<parallel>], iteration_bounds = array<i64: 2>, scalar_prefetch = 0 : i64, scratch_operands = 3 : i64, tpu.core_type = #tpu.core_type<tc>, window_params = [{transform_indices = @transform_0, window_bounds = array<i64: 4, 1, 9, 9, 4>}, {pipeline_mode = #tpu.pipeline_mode<synchronous>, transform_indices = @transform_1, window_bounds = array<i64: 36, 16>}, {pipeline_mode = #tpu.pipeline_mode<synchronous>, transform_indices = @transform_2, window_bounds = array<i64: 1, 8>}, {pipeline_mode = #tpu.pipeline_mode<synchronous>, transform_indices = @transform_3, window_bounds = array<i64: 72, 8>}, {pipeline_mode = #tpu.pipeline_mode<synchronous>, transform_indices = @transform_4, window_bounds = array<i64: 1, 8>}, {pipeline_mode = #tpu.pipeline_mode<synchronous>, transform_indices = @transform_5, window_bounds = array<i64: 1, 8>}, {transform_indices = @transform_6, window_bounds = array<i64: 64, 8>}]} {
    %c3 = arith.constant 3 : index
    %c0 = arith.constant 0 : index
    %c0_0 = arith.constant 0 : index
    %c0_1 = arith.constant 0 : index
    %c0_2 = arith.constant 0 : index
    %0 = vector.load %arg1[%c3, %c0, %c0_0, %c0_1, %c0_2] : memref<4x1x9x9x4xf32, #tpu.memory_space<vmem>>, vector<1x1x8x8x4xf32>
    %1 = vector.shape_cast %0 : vector<1x1x8x8x4xf32> to vector<1x8x8x4xf32>
    %2 = vector.shape_cast %1 : vector<1x8x8x4xf32> to vector<64x4xf32>
    %c0_3 = arith.constant 0 : index
    %c0_4 = arith.constant 0 : index
    %3 = vector.load %arg8[%c0_3, %c0_4] : memref<64x36xf32, #tpu.memory_space<vmem>>, vector<64x4xf32>
    tpu.vector_store %arg8[%c0_3, %c0_4], %2 {strides = array<i32>} : memref<64x36xf32, #tpu.memory_space<vmem>>, vector<64x4xf32>,
    %c0_5 = arith.constant 0 : index
    %c0_6 = arith.constant 0 : index
    %c0_7 = arith.constant 0 : index
    %c0_8 = arith.constant 0 : index
    %c0_9 = arith.constant 0 : index
    %4 = vector.load %arg1[%c0_5, %c0_6, %c0_7, %c0_8, %c0_9] : memref<4x1x9x9x4xf32, #tpu.memory_space<vmem>>, vector<1x1x8x8x4xf32>
    %5 = vector.shape_cast %4 : vector<1x1x8x8x4xf32> to vector<1x8x8x4xf32>
    %6 = vector.shape_cast %5 : vector<1x8x8x4xf32> to vector<64x4xf32>
    %c0_10 = arith.constant 0 : index
    %c4 = arith.constant 4 : index
    %7 = vector.load %arg8[%c0_10, %c4] : memref<64x36xf32, #tpu.memory_space<vmem>>, vector<64x4xf32>
    tpu.vector_store %arg8[%c0_10, %c4], %6 {strides = array<i32>} : memref<64x36xf32, #tpu.memory_space<vmem>>, vector<64x4xf32>,
    %c1 = arith.constant 1 : index
    %c0_11 = arith.constant 0 : index
    %c0_12 = arith.constant 0 : index
    %c0_13 = arith.constant 0 : index
    %c0_14 = arith.constant 0 : index
    %8 = vector.load %arg1[%c1, %c0_11, %c0_12, %c0_13, %c0_14] : memref<4x1x9x9x4xf32, #tpu.memory_space<vmem>>, vector<1x1x8x8x4xf32>
    %9 = vector.shape_cast %8 : vector<1x1x8x8x4xf32> to vector<1x8x8x4xf32>
    %10 = vector.shape_cast %9 : vector<1x8x8x4xf32> to vector<64x4xf32>
    %c0_15 = arith.constant 0 : index
    %c8 = arith.constant 8 : index
    %11 = vector.load %arg8[%c0_15, %c8] : memref<64x36xf32, #tpu.memory_space<vmem>>, vector<64x4xf32>
    tpu.vector_store %arg8[%c0_15, %c8], %10 {strides = array<i32>} : memref<64x36xf32, #tpu.memory_space<vmem>>, vector<64x4xf32>,
    %c0_16 = arith.constant 0 : index
    %c0_17 = arith.constant 0 : index
    %c0_18 = arith.constant 0 : index
    %c1_19 = arith.constant 1 : index
    %c0_20 = arith.constant 0 : index
    %12 = vector.load %arg1[%c0_16, %c0_17, %c0_18, %c1_19, %c0_20] : memref<4x1x9x9x4xf32, #tpu.memory_space<vmem>>, vector<1x1x8x8x4xf32>
    %13 = vector.shape_cast %12 : vector<1x1x8x8x4xf32> to vector<1x8x8x4xf32>
    %14 = vector.shape_cast %13 : vector<1x8x8x4xf32> to vector<64x4xf32>
    %c0_21 = arith.constant 0 : index
    %c12 = arith.constant 12 : index
    %15 = vector.load %arg8[%c0_21, %c12] : memref<64x36xf32, #tpu.memory_space<vmem>>, vector<64x4xf32>
    tpu.vector_store %arg8[%c0_21, %c12], %14 {strides = array<i32>} : memref<64x36xf32, #tpu.memory_space<vmem>>, vector<64x4xf32>,
    %c2 = arith.constant 2 : index
    %c0_22 = arith.constant 0 : index
    %c0_23 = arith.constant 0 : index
    %c0_24 = arith.constant 0 : index
    %c0_25 = arith.constant 0 : index
    %16 = vector.load %arg1[%c2, %c0_22, %c0_23, %c0_24, %c0_25] : memref<4x1x9x9x4xf32, #tpu.memory_space<vmem>>, vector<1x1x8x8x4xf32>
    %17 = vector.shape_cast %16 : vector<1x1x8x8x4xf32> to vector<1x8x8x4xf32>
    %18 = vector.shape_cast %17 : vector<1x8x8x4xf32> to vector<64x4xf32>
    %c0_26 = arith.constant 0 : index
    %c16 = arith.constant 16 : index
    %19 = vector.load %arg8[%c0_26, %c16] : memref<64x36xf32, #tpu.memory_space<vmem>>, vector<64x4xf32>
    tpu.vector_store %arg8[%c0_26, %c16], %18 {strides = array<i32>} : memref<64x36xf32, #tpu.memory_space<vmem>>, vector<64x4xf32>,
    %c2_27 = arith.constant 2 : index
    %c0_28 = arith.constant 0 : index
    %c0_29 = arith.constant 0 : index
    %c1_30 = arith.constant 1 : index
    %c0_31 = arith.constant 0 : index
    %20 = vector.load %arg1[%c2_27, %c0_28, %c0_29, %c1_30, %c0_31] : memref<4x1x9x9x4xf32, #tpu.memory_space<vmem>>, vector<1x1x8x8x4xf32>
    %21 = vector.shape_cast %20 : vector<1x1x8x8x4xf32> to vector<1x8x8x4xf32>
    %22 = vector.shape_cast %21 : vector<1x8x8x4xf32> to vector<64x4xf32>
    %c0_32 = arith.constant 0 : index
    %c20 = arith.constant 20 : index
    %23 = vector.load %arg8[%c0_32, %c20] : memref<64x36xf32, #tpu.memory_space<vmem>>, vector<64x4xf32>
    tpu.vector_store %arg8[%c0_32, %c20], %22 {strides = array<i32>} : memref<64x36xf32, #tpu.memory_space<vmem>>, vector<64x4xf32>,
    %c0_33 = arith.constant 0 : index
    %c0_34 = arith.constant 0 : index
    %c1_35 = arith.constant 1 : index
    %c0_36 = arith.constant 0 : index
    %c0_37 = arith.constant 0 : index
    %24 = vector.load %arg1[%c0_33, %c0_34, %c1_35, %c0_36, %c0_37] : memref<4x1x9x9x4xf32, #tpu.memory_space<vmem>>, vector<1x1x8x8x4xf32>
    %25 = vector.shape_cast %24 : vector<1x1x8x8x4xf32> to vector<1x8x8x4xf32>
    %26 = vector.shape_cast %25 : vector<1x8x8x4xf32> to vector<64x4xf32>
    %c0_38 = arith.constant 0 : index
    %c24 = arith.constant 24 : index
    %27 = vector.load %arg8[%c0_38, %c24] : memref<64x36xf32, #tpu.memory_space<vmem>>, vector<64x4xf32>
    tpu.vector_store %arg8[%c0_38, %c24], %26 {strides = array<i32>} : memref<64x36xf32, #tpu.memory_space<vmem>>, vector<64x4xf32>,
    %c1_39 = arith.constant 1 : index
    %c0_40 = arith.constant 0 : index
    %c1_41 = arith.constant 1 : index
    %c0_42 = arith.constant 0 : index
    %c0_43 = arith.constant 0 : index
    %28 = vector.load %arg1[%c1_39, %c0_40, %c1_41, %c0_42, %c0_43] : memref<4x1x9x9x4xf32, #tpu.memory_space<vmem>>, vector<1x1x8x8x4xf32>
    %29 = vector.shape_cast %28 : vector<1x1x8x8x4xf32> to vector<1x8x8x4xf32>
    %30 = vector.shape_cast %29 : vector<1x8x8x4xf32> to vector<64x4xf32>
    %c0_44 = arith.constant 0 : index
    %c28 = arith.constant 28 : index
    %31 = vector.load %arg8[%c0_44, %c28] : memref<64x36xf32, #tpu.memory_space<vmem>>, vector<64x4xf32>
    tpu.vector_store %arg8[%c0_44, %c28], %30 {strides = array<i32>} : memref<64x36xf32, #tpu.memory_space<vmem>>, vector<64x4xf32>,
    %c0_45 = arith.constant 0 : index
    %c0_46 = arith.constant 0 : index
    %c1_47 = arith.constant 1 : index
    %c1_48 = arith.constant 1 : index
    %c0_49 = arith.constant 0 : index
    %32 = vector.load %arg1[%c0_45, %c0_46, %c1_47, %c1_48, %c0_49] : memref<4x1x9x9x4xf32, #tpu.memory_space<vmem>>, vector<1x1x8x8x4xf32>
    %33 = vector.shape_cast %32 : vector<1x1x8x8x4xf32> to vector<1x8x8x4xf32>
    %34 = vector.shape_cast %33 : vector<1x8x8x4xf32> to vector<64x4xf32>
    %c0_50 = arith.constant 0 : index
    %c32 = arith.constant 32 : index
    %35 = vector.load %arg8[%c0_50, %c32] : memref<64x36xf32, #tpu.memory_space<vmem>>, vector<64x4xf32>
    tpu.vector_store %arg8[%c0_50, %c32], %34 {strides = array<i32>} : memref<64x36xf32, #tpu.memory_space<vmem>>, vector<64x4xf32>,
    %c0_51 = arith.constant 0 : index
    %c0_52 = arith.constant 0 : index
    %36 = vector.load %arg8[%c0_51, %c0_52] : memref<64x36xf32, #tpu.memory_space<vmem>>, vector<64x36xf32>
    %c0_53 = arith.constant 0 : index
    %c0_54 = arith.constant 0 : index
    %37 = vector.load %arg2[%c0_53, %c0_54] : memref<36x16xf32, #tpu.memory_space<vmem>>, vector<36x16xf32>
    %cst = arith.constant dense<0.000000e+00> : vector<64x16xf32>
    %38 = tpu.matmul %36, %37, %cst {dimension_numbers = #tpu.dot_dimension_numbers<[1], [0], [0], [1], [0, 0, 1, 1], [], []>} : vector<64x36xf32>, vector<36x16xf32>, vector<64x16xf32> -> vector<64x16xf32>
    %39 = vector.extract_strided_slice %38 {offsets = [0, 0], sizes = [64, 8], strides = [1, 1]} : vector<64x16xf32> to vector<64x8xf32>
    %c0_55 = arith.constant 0 : index
    %c0_56 = arith.constant 0 : index
    %40 = vector.load %arg3[%c0_55, %c0_56] : memref<1x8xf32, #tpu.memory_space<vmem>>, vector<1x8xf32>
    %41 = vector.broadcast %40 : vector<1x8xf32> to vector<64x8xf32>
    %42 = arith.addf %39, %41 : vector<64x8xf32>
    %cst_57 = arith.constant 0.000000e+00 : f32
    %43 = vector.broadcast %cst_57 : f32 to vector<64x8xf32>
    %44 = arith.maximumf %42, %43 : vector<64x8xf32>
    %45 = vector.extract_strided_slice %38 {offsets = [0, 8], sizes = [64, 8], strides = [1, 1]} : vector<64x16xf32> to vector<64x8xf32>
    %c0_58 = arith.constant 0 : index
    %c0_59 = arith.constant 0 : index
    %46 = vector.load %arg6[%c0_58, %c0_59] : memref<1x8xf32, #tpu.memory_space<vmem>>, vector<1x8xf32>
    %47 = vector.broadcast %46 : vector<1x8xf32> to vector<64x8xf32>
    %48 = arith.addf %45, %47 : vector<64x8xf32>
    %c0_60 = arith.constant 0 : index
    %c0_61 = arith.constant 0 : index
    %49 = vector.load %arg7[%c0_60, %c0_61] : memref<64x8xf32, #tpu.memory_space<vmem>>, vector<64x8xf32>
    tpu.vector_store %arg7[%c0_60, %c0_61], %48 {strides = array<i32>} : memref<64x8xf32, #tpu.memory_space<vmem>>, vector<64x8xf32>,
    %50 = vector.shape_cast %44 : vector<64x8xf32> to vector<1x8x8x8xf32>
    %cst_62 = arith.constant 0.000000e+00 : f32
    %51 = vector.broadcast %cst_62 : f32 to vector<1x1x8x8xf32>
    %cst_63 = arith.constant 0.000000e+00 : f32
    %52 = vector.broadcast %cst_63 : f32 to vector<1x10x1x8xf32>
    %53 = tpu.concatenate %51, %50, %51 in 1 : vector<1x1x8x8xf32>, vector<1x8x8x8xf32>, vector<1x1x8x8xf32> -> vector<1x10x8x8xf32>
    %54 = tpu.concatenate %52, %53, %52 in 2 : vector<1x10x1x8xf32>, vector<1x10x8x8xf32>, vector<1x10x1x8xf32> -> vector<1x10x10x8xf32>
    %c0_64 = arith.constant 0 : index
    %c0_65 = arith.constant 0 : index
    %c0_66 = arith.constant 0 : index
    %c0_67 = arith.constant 0 : index
    %55 = vector.load %arg9[%c0_64, %c0_65, %c0_66, %c0_67] : memref<1x10x10x8xf32, #tpu.memory_space<vmem>>, vector<1x10x10x8xf32>
    tpu.vector_store %arg9[%c0_64, %c0_65, %c0_66, %c0_67], %54 {strides = array<i32>} : memref<1x10x10x8xf32, #tpu.memory_space<vmem>>, vector<1x10x10x8xf32>,
    %c0_68 = arith.constant 0 : index
    %c1_69 = arith.constant 1 : index
    %c1_70 = arith.constant 1 : index
    %c0_71 = arith.constant 0 : index
    %56 = vector.load %arg9[%c0_68, %c1_69, %c1_70, %c0_71] : memref<1x10x10x8xf32, #tpu.memory_space<vmem>>, vector<1x8x8x8xf32>
    %57 = vector.shape_cast %56 : vector<1x8x8x8xf32> to vector<64x8xf32>
    %c0_72 = arith.constant 0 : index
    %c0_73 = arith.constant 0 : index
    %58 = vector.load %arg10[%c0_72, %c0_73] : memref<64x72xf32, #tpu.memory_space<vmem>>, vector<64x8xf32>
    tpu.vector_store %arg10[%c0_72, %c0_73], %57 {strides = array<i32>} : memref<64x72xf32, #tpu.memory_space<vmem>>, vector<64x8xf32>,
    %c0_74 = arith.constant 0 : index
    %c0_75 = arith.constant 0 : index
    %c0_76 = arith.constant 0 : index
    %c0_77 = arith.constant 0 : index
    %59 = vector.load %arg9[%c0_74, %c0_75, %c0_76, %c0_77] : memref<1x10x10x8xf32, #tpu.memory_space<vmem>>, vector<1x8x8x8xf32>
    %60 = vector.shape_cast %59 : vector<1x8x8x8xf32> to vector<64x8xf32>
    %c0_78 = arith.constant 0 : index
    %c8_79 = arith.constant 8 : index
    %61 = vector.load %arg10[%c0_78, %c8_79] : memref<64x72xf32, #tpu.memory_space<vmem>>, vector<64x8xf32>
    tpu.vector_store %arg10[%c0_78, %c8_79], %60 {strides = array<i32>} : memref<64x72xf32, #tpu.memory_space<vmem>>, vector<64x8xf32>,
    %c0_80 = arith.constant 0 : index
    %c0_81 = arith.constant 0 : index
    %c1_82 = arith.constant 1 : index
    %c0_83 = arith.constant 0 : index
    %62 = vector.load %arg9[%c0_80, %c0_81, %c1_82, %c0_83] : memref<1x10x10x8xf32, #tpu.memory_space<vmem>>, vector<1x8x8x8xf32>
    %63 = vector.shape_cast %62 : vector<1x8x8x8xf32> to vector<64x8xf32>
    %c0_84 = arith.constant 0 : index
    %c16_85 = arith.constant 16 : index
    %64 = vector.load %arg10[%c0_84, %c16_85] : memref<64x72xf32, #tpu.memory_space<vmem>>, vector<64x8xf32>
    tpu.vector_store %arg10[%c0_84, %c16_85], %63 {strides = array<i32>} : memref<64x72xf32, #tpu.memory_space<vmem>>, vector<64x8xf32>,
    %c0_86 = arith.constant 0 : index
    %c0_87 = arith.constant 0 : index
    %c2_88 = arith.constant 2 : index
    %c0_89 = arith.constant 0 : index
    %65 = vector.load %arg9[%c0_86, %c0_87, %c2_88, %c0_89] : memref<1x10x10x8xf32, #tpu.memory_space<vmem>>, vector<1x8x8x8xf32>
    %66 = vector.shape_cast %65 : vector<1x8x8x8xf32> to vector<64x8xf32>
    %c0_90 = arith.constant 0 : index
    %c24_91 = arith.constant 24 : index
    %67 = vector.load %arg10[%c0_90, %c24_91] : memref<64x72xf32, #tpu.memory_space<vmem>>, vector<64x8xf32>
    tpu.vector_store %arg10[%c0_90, %c24_91], %66 {strides = array<i32>} : memref<64x72xf32, #tpu.memory_space<vmem>>, vector<64x8xf32>,
    %c0_92 = arith.constant 0 : index
    %c1_93 = arith.constant 1 : index
    %c0_94 = arith.constant 0 : index
    %c0_95 = arith.constant 0 : index
    %68 = vector.load %arg9[%c0_92, %c1_93, %c0_94, %c0_95] : memref<1x10x10x8xf32, #tpu.memory_space<vmem>>, vector<1x8x8x8xf32>
    %69 = vector.shape_cast %68 : vector<1x8x8x8xf32> to vector<64x8xf32>
    %c0_96 = arith.constant 0 : index
    %c32_97 = arith.constant 32 : index
    %70 = vector.load %arg10[%c0_96, %c32_97] : memref<64x72xf32, #tpu.memory_space<vmem>>, vector<64x8xf32>
    tpu.vector_store %arg10[%c0_96, %c32_97], %69 {strides = array<i32>} : memref<64x72xf32, #tpu.memory_space<vmem>>, vector<64x8xf32>,
    %c0_98 = arith.constant 0 : index
    %c1_99 = arith.constant 1 : index
    %c2_100 = arith.constant 2 : index
    %c0_101 = arith.constant 0 : index
    %71 = vector.load %arg9[%c0_98, %c1_99, %c2_100, %c0_101] : memref<1x10x10x8xf32, #tpu.memory_space<vmem>>, vector<1x8x8x8xf32>
    %72 = vector.shape_cast %71 : vector<1x8x8x8xf32> to vector<64x8xf32>
    %c0_102 = arith.constant 0 : index
    %c40 = arith.constant 40 : index
    %73 = vector.load %arg10[%c0_102, %c40] : memref<64x72xf32, #tpu.memory_space<vmem>>, vector<64x8xf32>
    tpu.vector_store %arg10[%c0_102, %c40], %72 {strides = array<i32>} : memref<64x72xf32, #tpu.memory_space<vmem>>, vector<64x8xf32>,
    %c0_103 = arith.constant 0 : index
    %c2_104 = arith.constant 2 : index
    %c0_105 = arith.constant 0 : index
    %c0_106 = arith.constant 0 : index
    %74 = vector.load %arg9[%c0_103, %c2_104, %c0_105, %c0_106] : memref<1x10x10x8xf32, #tpu.memory_space<vmem>>, vector<1x8x8x8xf32>
    %75 = vector.shape_cast %74 : vector<1x8x8x8xf32> to vector<64x8xf32>
    %c0_107 = arith.constant 0 : index
    %c48 = arith.constant 48 : index
    %76 = vector.load %arg10[%c0_107, %c48] : memref<64x72xf32, #tpu.memory_space<vmem>>, vector<64x8xf32>
    tpu.vector_store %arg10[%c0_107, %c48], %75 {strides = array<i32>} : memref<64x72xf32, #tpu.memory_space<vmem>>, vector<64x8xf32>,
    %c0_108 = arith.constant 0 : index
    %c2_109 = arith.constant 2 : index
    %c1_110 = arith.constant 1 : index
    %c0_111 = arith.constant 0 : index
    %77 = vector.load %arg9[%c0_108, %c2_109, %c1_110, %c0_111] : memref<1x10x10x8xf32, #tpu.memory_space<vmem>>, vector<1x8x8x8xf32>
    %78 = vector.shape_cast %77 : vector<1x8x8x8xf32> to vector<64x8xf32>
    %c0_112 = arith.constant 0 : index
    %c56 = arith.constant 56 : index
    %79 = vector.load %arg10[%c0_112, %c56] : memref<64x72xf32, #tpu.memory_space<vmem>>, vector<64x8xf32>
    tpu.vector_store %arg10[%c0_112, %c56], %78 {strides = array<i32>} : memref<64x72xf32, #tpu.memory_space<vmem>>, vector<64x8xf32>,
    %c0_113 = arith.constant 0 : index
    %c2_114 = arith.constant 2 : index
    %c2_115 = arith.constant 2 : index
    %c0_116 = arith.constant 0 : index
    %80 = vector.load %arg9[%c0_113, %c2_114, %c2_115, %c0_116] : memref<1x10x10x8xf32, #tpu.memory_space<vmem>>, vector<1x8x8x8xf32>
    %81 = vector.shape_cast %80 : vector<1x8x8x8xf32> to vector<64x8xf32>
    %c0_117 = arith.constant 0 : index
    %c64 = arith.constant 64 : index
    %82 = vector.load %arg10[%c0_117, %c64] : memref<64x72xf32, #tpu.memory_space<vmem>>, vector<64x8xf32>
    tpu.vector_store %arg10[%c0_117, %c64], %81 {strides = array<i32>} : memref<64x72xf32, #tpu.memory_space<vmem>>, vector<64x8xf32>,
    %c0_118 = arith.constant 0 : index
    %c0_119 = arith.constant 0 : index
    %83 = vector.load %arg10[%c0_118, %c0_119] : memref<64x72xf32, #tpu.memory_space<vmem>>, vector<64x72xf32>
    %c0_120 = arith.constant 0 : index
    %c0_121 = arith.constant 0 : index
    %84 = vector.load %arg4[%c0_120, %c0_121] : memref<72x8xf32, #tpu.memory_space<vmem>>, vector<72x8xf32>
    %cst_122 = arith.constant dense<0.000000e+00> : vector<64x8xf32>
    %85 = tpu.matmul %83, %84, %cst_122 {dimension_numbers = #tpu.dot_dimension_numbers<[1], [0], [0], [1], [0, 0, 1, 1], [], []>} : vector<64x72xf32>, vector<72x8xf32>, vector<64x8xf32> -> vector<64x8xf32>
    %c0_123 = arith.constant 0 : index
    %c0_124 = arith.constant 0 : index
    %86 = vector.load %arg5[%c0_123, %c0_124] : memref<1x8xf32, #tpu.memory_space<vmem>>, vector<1x8xf32>
    %87 = vector.broadcast %86 : vector<1x8xf32> to vector<64x8xf32>
    %88 = arith.addf %85, %87 : vector<64x8xf32>
    %c0_125 = arith.constant 0 : index
    %c0_126 = arith.constant 0 : index
    %89 = vector.load %arg7[%c0_125, %c0_126] : memref<64x8xf32, #tpu.memory_space<vmem>>, vector<64x8xf32>
    %90 = arith.addf %88, %89 : vector<64x8xf32>
    %cst_127 = arith.constant 0.000000e+00 : f32
    %91 = vector.broadcast %cst_127 : f32 to vector<64x8xf32>
    %92 = arith.maximumf %90, %91 : vector<64x8xf32>
    %c0_128 = arith.constant 0 : index
    %c0_129 = arith.constant 0 : index
    %93 = vector.load %arg7[%c0_128, %c0_129] : memref<64x8xf32, #tpu.memory_space<vmem>>, vector<64x8xf32>
    tpu.vector_store %arg7[%c0_128, %c0_129], %92 {strides = array<i32>} : memref<64x8xf32, #tpu.memory_space<vmem>>, vector<64x8xf32>,
    return
  }
  func.func @transform_0(%arg0: i32) -> (i32, i32, i32, i32, i32) {
    %c0_i32 = arith.constant 0 : i32
    %c0_i32_0 = arith.constant 0 : i32
    %c0_i32_1 = arith.constant 0 : i32
    %c0_i32_2 = arith.constant 0 : i32
    %c0_i32_3 = arith.constant 0 : i32
    return %c0_i32, %arg0, %c0_i32_0, %c0_i32_1, %c0_i32_2 : i32, i32, i32, i32, i32
  }
  func.func @transform_1(%arg0: i32) -> (i32, i32) {
    %c0_i32 = arith.constant 0 : i32
    %c0_i32_0 = arith.constant 0 : i32
    %c0_i32_1 = arith.constant 0 : i32
    return %c0_i32, %c0_i32_0 : i32, i32
  }
  func.func @transform_2(%arg0: i32) -> (i32, i32) {
    %c0_i32 = arith.constant 0 : i32
    %c0_i32_0 = arith.constant 0 : i32
    %c0_i32_1 = arith.constant 0 : i32
    return %c0_i32, %c0_i32_0 : i32, i32
  }
  func.func @transform_3(%arg0: i32) -> (i32, i32) {
    %c0_i32 = arith.constant 0 : i32
    %c0_i32_0 = arith.constant 0 : i32
    %c0_i32_1 = arith.constant 0 : i32
    return %c0_i32, %c0_i32_0 : i32, i32
  }
  func.func @transform_4(%arg0: i32) -> (i32, i32) {
    %c0_i32 = arith.constant 0 : i32
    %c0_i32_0 = arith.constant 0 : i32
    %c0_i32_1 = arith.constant 0 : i32
    return %c0_i32, %c0_i32_0 : i32, i32
  }
  func.func @transform_5(%arg0: i32) -> (i32, i32) {
    %c0_i32 = arith.constant 0 : i32
    %c0_i32_0 = arith.constant 0 : i32
    %c0_i32_1 = arith.constant 0 : i32
    return %c0_i32, %c0_i32_0 : i32, i32
  }
  func.func @transform_6(%arg0: i32) -> (i32, i32) {
    %c0_i32 = arith.constant 0 : i32
    %c0_i32_0 = arith.constant 0 : i32
    return %arg0, %c0_i32 : i32, i32
  }
}

</mosaic_0001>

<bundles_post_ra>
// kernel: tpu_custom_call.1
= control target key start
LH: loop header
LB: loop body
LE: loop exit
PB: predicated region body
PF: predicated region fallthrough
CT: control target
= control target key end

     0   :  { %s2245_s21 = smov 0   ;;  %s2247_s22 = smov 0   ;;  %s2966_s0 = inlined_call_operand.vmem [shape: f32[4,2,9,9,4], index: 0, kind: input, shape index: {}]   ;;  %s2967_s1 = inlined_call_operand.vmem [shape: f32[36,16], index: 1, kind: input, shape index: {}]   ;;  %s2968_s2 = inlined_call_operand.vmem [shape: f32[1,8], index: 2, kind: input, shape index: {}]   ;;  %s2969_s3 = inlined_call_operand.vmem [shape: f32[72,8], index: 3, kind: input, shape index: {}]   ;;  %s2970_s4 = inlined_call_operand.vmem [shape: f32[1,8], index: 4, kind: input, shape index: {}]   ;;  %s2971_s5 = inlined_call_operand.vmem [shape: f32[1,8], index: 5, kind: input, shape index: {}]   ;;  %s2972_s6 = inlined_call_operand.vmem [shape: f32[128,8], index: 6, kind: output, shape index: {}]  }
   0x1   :  { %s2249_s23 = smov 0  }
   0x2 LB: > { %s1939_s24 = sadd.s32 4294967295, %s2194_s23   ;;  %s2262_s25 = sadd.s32 1, %s2194_s23   ;;  %s2194_s23 = sphi %s2249_s23, %s2975_s23   ;;  %s2190_s22 = sphi %s2247_s22, %s2974_s22   ;;  %s2186_s21 = sphi %s2245_s21, %s2973_s21  }
   0x3   : > { %s20_s26 = ssub.s32 %s2194_s23, %s2262_s25  ;;  %s23_s27 = sadd.s32 1, %s2190_s22 }
   0x4   : > { %p21_p0 = scmp.eq.s32.totalorder %s20_s26, 0  ;;  %p30_p1 = scmp.ne.s32.totalorder %s2190_s22, %s2186_s21 }
   0x5   : > { %p31_p2 = scmp.eq.s32.totalorder %s2194_s23, 0  ;;  %p1942_p4 = scmp.ge.s32.totalorder %s2194_s23, 2 }
   0x6   : > { %s2271_s28 = scalar_select %p21_p0, %s2190_s22, %s23_s27  }
   0x7   : > { %p32_p3 = por %p31_p2, %p30_p1  ;;  %202 = sbr.rel (%p1942_p4) target bundleno = 55 (0x37), region = 36 }
   0xe   : > { %205 = sbr.rel (!%p32_p3) target bundleno = 55 (0x37), region = 40  ;;  %s207_s29 = sand.u32 (%p32_p3), 1, %s2190_s22  }
   0xf   : > { %s2132_s30 = smul.u32 (%p32_p3), 144, %s2194_s23 }
  0x10   : > { %s2131_s7 = smul.u32 (%p32_p3), 576, %s207_s29 }
  0x11   : > { %s2279_s10 = scalar_lea.vmem (%p32_p3), %s2966_s0, %s2132_s30 }
  0x12   : > { %v382_v0 = vld [vmem:[%s2279_s10] sm:$0xff] (%p32_p3)  ;;  %v384_v1 = vld [vmem:[%s2279_s10 + $0x8] sm:$0xff] (%p32_p3)  ;;  %v386_v2 = vld [vmem:[%s2279_s10 + $0x10] sm:$0xff] (%p32_p3)  ;;  %s2284_s11 = scalar_lea.vmem (%p32_p3), [#allocation5], %s2131_s7 }
  0x13   : > { %383 = vst [vmem:[%s2284_s11] sm:$0xff] (%p32_p3), %v382_v0  ;;  %385 = vst [vmem:[%s2284_s11 + $0x8] sm:$0xff] (%p32_p3), %v384_v1  ;;  %v388_v3 = vld [vmem:[%s2279_s10 + $0x18] sm:$0xff] (%p32_p3)  ;;  %v390_v4 = vld [vmem:[%s2279_s10 + $0x20] sm:$0xff] (%p32_p3) }
  0x14   : > { %387 = vst [vmem:[%s2284_s11 + $0x10] sm:$0xff] (%p32_p3), %v386_v2  ;;  %v392_v5 = vld [vmem:[%s2279_s10 + $0x28] sm:$0xff] (%p32_p3)  ;;  %389 = vst [vmem:[%s2284_s11 + $0x18] sm:$0xff] (%p32_p3), %v388_v3  ;;  %v394_v6 = vld [vmem:[%s2279_s10 + $0x30] sm:$0xff] (%p32_p3) }
  0x15   : > { %391 = vst [vmem:[%s2284_s11 + $0x20] sm:$0xff] %v390_v4  ;;  %393 = vst [vmem:[%s2284_s11 + $0x28] sm:$0xff] %v392_v5  ;;  %v396_v7 = vld [vmem:[%s2279_s10 + $0x38] sm:$0xff]  ;;  %v398_v8 = vld [vmem:[%s2279_s10 + $0x40] sm:$0xff] }
  0x16   : > { %395 = vst [vmem:[%s2284_s11 + $0x30] sm:$0xff] %v394_v6  ;;  %397 = vst [vmem:[%s2284_s11 + $0x38] sm:$0xff] %v396_v7  ;;  %v400_v9 = vld [vmem:[%s2279_s10 + $0x48] sm:$0xff]  ;;  %v402_v10 = vld [vmem:[%s2279_s10 + $0x50] sm:$0xff] }
  0x17   : > { %399 = vst [vmem:[%s2284_s11 + $0x40] sm:$0xff] %v398_v8  ;;  %v404_v11 = vld [vmem:[%s2279_s10 + $0x58] sm:$0xff]  ;;  %401 = vst [vmem:[%s2284_s11 + $0x48] sm:$0xff] %v400_v9  ;;  %v406_v12 = vld [vmem:[%s2279_s10 + $0x60] sm:$0xff] }
  0x18   : > { %403 = vst [vmem:[%s2284_s11 + $0x50] sm:$0xff] %v402_v10  ;;  %405 = vst [vmem:[%s2284_s11 + $0x58] sm:$0xff] %v404_v11  ;;  %v408_v13 = vld [vmem:[%s2279_s10 + $0x68] sm:$0xff]  ;;  %v410_v14 = vld [vmem:[%s2279_s10 + $0x70] sm:$0xff] }
  0x19   : > { %407 = vst [vmem:[%s2284_s11 + $0x60] sm:$0xff] %v406_v12  ;;  %409 = vst [vmem:[%s2284_s11 + $0x68] sm:$0xff] %v408_v13  ;;  %v412_v15 = vld [vmem:[%s2279_s10 + $0x78] sm:$0xff]  ;;  %v414_v16 = vld [vmem:[%s2279_s10 + $0x80] sm:$0xff] }
  0x1a   : > { %411 = vst [vmem:[%s2284_s11 + $0x70] sm:$0xff] %v410_v14  ;;  %v416_v17 = vld [vmem:[%s2279_s10 + $0x88] sm:$0xff]  ;;  %413 = vst [vmem:[%s2284_s11 + $0x78] sm:$0xff] %v412_v15  ;;  %v418_v18 = vld [vmem:[%s2279_s10 + $0x120] sm:$0xff] }
  0x1b   : > { %415 = vst [vmem:[%s2284_s11 + $0x80] sm:$0xff] %v414_v16  ;;  %417 = vst [vmem:[%s2284_s11 + $0x88] sm:$0xff] %v416_v17  ;;  %v420_v19 = vld [vmem:[%s2279_s10 + $0x128] sm:$0xff]  ;;  %v422_v20 = vld [vmem:[%s2279_s10 + $0x130] sm:$0xff] }
  0x1c   : > { %419 = vst [vmem:[%s2284_s11 + $0x90] sm:$0xff] %v418_v18  ;;  %421 = vst [vmem:[%s2284_s11 + $0x98] sm:$0xff] %v420_v19  ;;  %v424_v21 = vld [vmem:[%s2279_s10 + $0x138] sm:$0xff]  ;;  %v426_v22 = vld [vmem:[%s2279_s10 + $0x140] sm:$0xff] }
  0x1d   : > { %423 = vst [vmem:[%s2284_s11 + $0xa0] sm:$0xff] %v422_v20  ;;  %v428_v23 = vld [vmem:[%s2279_s10 + $0x148] sm:$0xff]  ;;  %425 = vst [vmem:[%s2284_s11 + $0xa8] sm:$0xff] %v424_v21  ;;  %v430_v24 = vld [vmem:[%s2279_s10 + $0x150] sm:$0xff] }
  0x1e   : > { %427 = vst [vmem:[%s2284_s11 + $0xb0] sm:$0xff] %v426_v22  ;;  %429 = vst [vmem:[%s2284_s11 + $0xb8] sm:$0xff] %v428_v23  ;;  %v432_v25 = vld [vmem:[%s2279_s10 + $0x158] sm:$0xff]  ;;  %v434_v26 = vld [vmem:[%s2279_s10 + $0x160] sm:$0xff] }
  0x1f   : > { %431 = vst [vmem:[%s2284_s11 + $0xc0] sm:$0xff] %v430_v24  ;;  %433 = vst [vmem:[%s2284_s11 + $0xc8] sm:$0xff] %v432_v25  ;;  %v436_v27 = vld [vmem:[%s2279_s10 + $0x168] sm:$0xff]  ;;  %v438_v28 = vld [vmem:[%s2279_s10 + $0x170] sm:$0xff] }
  0x20   : > { %435 = vst [vmem:[%s2284_s11 + $0xd0] sm:$0xff] %v434_v26  ;;  %v440_v29 = vld [vmem:[%s2279_s10 + $0x178] sm:$0xff]  ;;  %437 = vst [vmem:[%s2284_s11 + $0xd8] sm:$0xff] %v436_v27  ;;  %v442_v30 = vld [vmem:[%s2279_s10 + $0x180] sm:$0xff] }
  0x21   : > { %439 = vst [vmem:[%s2284_s11 + $0xe0] sm:$0xff] %v438_v28  ;;  %441 = vst [vmem:[%s2284_s11 + $0xe8] sm:$0xff] %v440_v29  ;;  %v444_v31 = vld [vmem:[%s2279_s10 + $0x188] sm:$0xff]  ;;  %v446_v32 = vld [vmem:[%s2279_s10 + $0x190] sm:$0xff] }
  0x22   : > { %443 = vst [vmem:[%s2284_s11 + $0xf0] sm:$0xff] %v442_v30  ;;  %445 = vst [vmem:[%s2284_s11 + $0xf8] sm:$0xff] %v444_v31  ;;  %v448_v33 = vld [vmem:[%s2279_s10 + $0x198] sm:$0xff]  ;;  %v450_v34 = vld [vmem:[%s2279_s10 + $0x1a0] sm:$0xff] }
  0x23   : > { %447 = vst [vmem:[%s2284_s11 + $0x100] sm:$0xff] %v446_v32  ;;  %v452_v35 = vld [vmem:[%s2279_s10 + $0x1a8] sm:$0xff]  ;;  %449 = vst [vmem:[%s2284_s11 + $0x108] sm:$0xff] %v448_v33  ;;  %v454_v36 = vld [vmem:[%s2279_s10 + $0x240] sm:$0xff] }
  0x24   : > { %451 = vst [vmem:[%s2284_s11 + $0x110] sm:$0xff] %v450_v34  ;;  %453 = vst [vmem:[%s2284_s11 + $0x118] sm:$0xff] %v452_v35  ;;  %v456_v37 = vld [vmem:[%s2279_s10 + $0x248] sm:$0xff]  ;;  %v458_v38 = vld [vmem:[%s2279_s10 + $0x250] sm:$0xff] }
  0x25   : > { %455 = vst [vmem:[%s2284_s11 + $0x120] sm:$0xff] %v454_v36  ;;  %457 = vst [vmem:[%s2284_s11 + $0x128] sm:$0xff] %v456_v37  ;;  %v460_v39 = vld [vmem:[%s2279_s10 + $0x258] sm:$0xff]  ;;  %v462_v40 = vld [vmem:[%s2279_s10 + $0x260] sm:$0xff] }
  0x26   : > { %459 = vst [vmem:[%s2284_s11 + $0x130] sm:$0xff] %v458_v38  ;;  %v464_v41 = vld [vmem:[%s2279_s10 + $0x268] sm:$0xff]  ;;  %461 = vst [vmem:[%s2284_s11 + $0x138] sm:$0xff] %v460_v39  ;;  %v466_v42 = vld [vmem:[%s2279_s10 + $0x270] sm:$0xff] }
  0x27   : > { %463 = vst [vmem:[%s2284_s11 + $0x140] sm:$0xff] %v462_v40  ;;  %465 = vst [vmem:[%s2284_s11 + $0x148] sm:$0xff] %v464_v41  ;;  %v468_v43 = vld [vmem:[%s2279_s10 + $0x278] sm:$0xff]  ;;  %v470_v44 = vld [vmem:[%s2279_s10 + $0x280] sm:$0xff] }
  0x28   : > { %467 = vst [vmem:[%s2284_s11 + $0x150] sm:$0xff] %v466_v42  ;;  %469 = vst [vmem:[%s2284_s11 + $0x158] sm:$0xff] %v468_v43  ;;  %v472_v45 = vld [vmem:[%s2279_s10 + $0x288] sm:$0xff]  ;;  %v474_v46 = vld [vmem:[%s2279_s10 + $0x290] sm:$0xff] }
  0x29   : > { %471 = vst [vmem:[%s2284_s11 + $0x160] sm:$0xff] %v470_v44  ;;  %v476_v47 = vld [vmem:[%s2279_s10 + $0x298] sm:$0xff]  ;;  %473 = vst [vmem:[%s2284_s11 + $0x168] sm:$0xff] %v472_v45  ;;  %v478_v48 = vld [vmem:[%s2279_s10 + $0x2a0] sm:$0xff] }
  0x2a   : > { %475 = vst [vmem:[%s2284_s11 + $0x170] sm:$0xff] %v474_v46  ;;  %477 = vst [vmem:[%s2284_s11 + $0x178] sm:$0xff] %v476_v47  ;;  %v480_v49 = vld [vmem:[%s2279_s10 + $0x2a8] sm:$0xff]  ;;  %v482_v50 = vld [vmem:[%s2279_s10 + $0x2b0] sm:$0xff] }
  0x2b   : > { %479 = vst [vmem:[%s2284_s11 + $0x180] sm:$0xff] %v478_v48  ;;  %481 = vst [vmem:[%s2284_s11 + $0x188] sm:$0xff] %v480_v49  ;;  %v484_v51 = vld [vmem:[%s2279_s10 + $0x2b8] sm:$0xff]  ;;  %v486_v52 = vld [vmem:[%s2279_s10 + $0x2c0] sm:$0xff] }
  0x2c   : > { %483 = vst [vmem:[%s2284_s11 + $0x190] sm:$0xff] %v482_v50  ;;  %v488_v53 = vld [vmem:[%s2279_s10 + $0x2c8] sm:$0xff]  ;;  %485 = vst [vmem:[%s2284_s11 + $0x198] sm:$0xff] %v484_v51  ;;  %v490_v54 = vld [vmem:[%s2279_s10 + $0x360] sm:$0xff] }
  0x2d   : > { %487 = vst [vmem:[%s2284_s11 + $0x1a0] sm:$0xff] %v486_v52  ;;  %489 = vst [vmem:[%s2284_s11 + $0x1a8] sm:$0xff] %v488_v53  ;;  %v492_v55 = vld [vmem:[%s2279_s10 + $0x368] sm:$0xff]  ;;  %v494_v56 = vld [vmem:[%s2279_s10 + $0x370] sm:$0xff] }
  0x2e   : > { %491 = vst [vmem:[%s2284_s11 + $0x1b0] sm:$0xff] %v490_v54  ;;  %493 = vst [vmem:[%s2284_s11 + $0x1b8] sm:$0xff] %v492_v55  ;;  %v496_v57 = vld [vmem:[%s2279_s10 + $0x378] sm:$0xff]  ;;  %v498_v58 = vld [vmem:[%s2279_s10 + $0x380] sm:$0xff] }
  0x2f   : > { %495 = vst [vmem:[%s2284_s11 + $0x1c0] sm:$0xff] %v494_v56  ;;  %v500_v59 = vld [vmem:[%s2279_s10 + $0x388] sm:$0xff]  ;;  %497 = vst [vmem:[%s2284_s11 + $0x1c8] sm:$0xff] %v496_v57  ;;  %v502_v60 = vld [vmem:[%s2279_s10 + $0x390] sm:$0xff] }
  0x30   : > { %499 = vst [vmem:[%s2284_s11 + $0x1d0] sm:$0xff] %v498_v58  ;;  %501 = vst [vmem:[%s2284_s11 + $0x1d8] sm:$0xff] %v500_v59  ;;  %v504_v61 = vld [vmem:[%s2279_s10 + $0x398] sm:$0xff]  ;;  %v506_v62 = vld [vmem:[%s2279_s10 + $0x3a0] sm:$0xff] }
  0x31   : > { %503 = vst [vmem:[%s2284_s11 + $0x1e0] sm:$0xff] %v502_v60  ;;  %505 = vst [vmem:[%s2284_s11 + $0x1e8] sm:$0xff] %v504_v61  ;;  %v508_v63 = vld [vmem:[%s2279_s10 + $0x3a8] sm:$0xff]  ;;  %v510_v0 = vld [vmem:[%s2279_s10 + $0x3b0] sm:$0xff] }
  0x32   : > { %507 = vst [vmem:[%s2284_s11 + $0x1f0] sm:$0xff] %v506_v62  ;;  %v512_v1 = vld [vmem:[%s2279_s10 + $0x3b8] sm:$0xff]  ;;  %509 = vst [vmem:[%s2284_s11 + $0x1f8] sm:$0xff] %v508_v63  ;;  %v514_v2 = vld [vmem:[%s2279_s10 + $0x3c0] sm:$0xff] }
  0x33   : > { %511 = vst [vmem:[%s2284_s11 + $0x200] sm:$0xff] %v510_v0  ;;  %513 = vst [vmem:[%s2284_s11 + $0x208] sm:$0xff] %v512_v1  ;;  %v516_v3 = vld [vmem:[%s2279_s10 + $0x3c8] sm:$0xff]  ;;  %v518_v4 = vld [vmem:[%s2279_s10 + $0x3d0] sm:$0xff] }
  0x34   : > { %515 = vst [vmem:[%s2284_s11 + $0x210] sm:$0xff] %v514_v2  ;;  %517 = vst [vmem:[%s2284_s11 + $0x218] sm:$0xff] %v516_v3  ;;  %v520_v5 = vld [vmem:[%s2279_s10 + $0x3d8] sm:$0xff]  ;;  %v522_v6 = vld [vmem:[%s2279_s10 + $0x3e0] sm:$0xff] }
  0x35   : > { %519 = vst [vmem:[%s2284_s11 + $0x220] sm:$0xff] %v518_v4  ;;  %v524_v7 = vld [vmem:[%s2279_s10 + $0x3e8] sm:$0xff]  ;;  %521 = vst [vmem:[%s2284_s11 + $0x228] sm:$0xff] %v520_v5 }
  0x36   : > { %523 = vst [vmem:[%s2284_s11 + $0x230] sm:$0xff] %v522_v6  ;;  %525 = vst [vmem:[%s2284_s11 + $0x238] sm:$0xff] %v524_v7 }
  0x37 PF: > { %p1944_p5 = scmp.ge.s32.totalorder %s2194_s23, 1  ;;  %p530_p6 = scmp.lt.s32.totalorder %s2194_s23, 3 }
  0x39   : > { %p531_p7 = pnand %p1944_p5, %p530_p6 }
  0x3a   : > { %s537_s12 = sand.u32 (!%p531_p7), 1, %s2186_s21   ;;  %s2196_s15 = smov (!%p531_p7), 8   ;;  %vm581_vm0 = vcmask (!%p531_p7), 31744   ;;  %v994_v28 = vld [vmem:[%s2967_s1] sm:$0xff] (!%p531_p7)  ;;  %v995_v29 = vld [vmem:[%s2967_s1 + $0x8] sm:$0xff] (!%p531_p7)  ;;  %v996_v33 = vld [vmem:[%s2967_s1 + $0x10] sm:$0xff] (!%p531_p7) }
  0x3b   : > { %534 = sbr.rel (%p531_p7) target bundleno = 938 (0x3aa), region = 78  ;;  %s2197_s16 = smov (!%p531_p7), 4   ;;  %v2107_v30 = vpack.c.bf16 (!%p531_p7), %v995_v29, %v994_v28  ;;  %v997_v34 = vld [vmem:[%s2967_s1 + $0x18] sm:$0xff] (!%p531_p7)  ;;  %v998_v37 = vld [vmem:[%s2967_s1 + $0x20] sm:$0xf] (!%p531_p7)  ;;  %vm1024_vm1 = vcmask (!%p531_p7), 1043456  }
  0x3c   : > { %s2133_s13 = smul.u32 (!%p531_p7), 576, %s537_s12  ;;  %s2198_s17 = smov (!%p531_p7), 12   ;;  %v2111_v35 = vpack.c.bf16 (!%p531_p7), %v997_v34, %v996_v33  ;;  %vm630_vm2 = vcmask (!%p531_p7), 64544   ;;  %vm680_vm3 = vcmask (!%p531_p7), 97344   ;;  %vm729_vm4 = vcmask (!%p531_p7), 130144  }
  0x3d   : > { %s2199_s18 = smov (!%p531_p7), 16   ;;  %s2200_s19 = smov (!%p531_p7), 20   ;;  %2108 = vmatprep.subr.bf16.mxu0 (!%p531_p7), %v2107_v30  ;;  %vm779_vm5 = vcmask (!%p531_p7), 162944   ;;  %vm828_vm6 = vcmask (!%p531_p7), 195744   ;;  %vm878_vm7 = vcmask (!%p531_p7), 228544   ;;  %vm928_vm8 = vcmask (!%p531_p7), 261344  }
  0x3e   : > { %s2430_s14 = scalar_lea.vmem (!%p531_p7), [#allocation5], %s2133_s13  ;;  %s2201_s20 = smov (!%p531_p7), 24   ;;  %2110 = vmatpush3.bf16.msra.mxu0 (!%p531_p7), %v2107_v30  ;;  %vm977_vm9 = vcmask (!%p531_p7), 294144   ;;  %vm999_vm10 = vcmask (!%p531_p7), 293888   ;;  %vm1241_vm11 = vcmask (!%p531_p7), 1040384   ;;  %vm1205_vm12 = vcmask (!%p531_p7), 64512  }
  0x3f   : > { %v1955_v8 = vld [vmem:[%s2430_s14 + $0x90] sm:$0xff] (!%p531_p7)  ;;  %v590_v9 = vld [vmem:[%s2430_s14] sm:$0xff] (!%p531_p7)  ;;  %s2202_s30 = smov (!%p531_p7), 28   ;;  %2112 = vmatprep.subr.bf16.mxu0 (!%p531_p7), %v2111_v35  ;;  %s2203_s13 = smov (!%p531_p7), 32   ;;  %vm1261_vm13 = vcmask (!%p531_p7), 58368   ;;  %vm1338_vm14 = vcmask (!%p531_p7), 130112  }
  0x40   : > { %656 = vrot.lane.b32.xlu1 (!%p531_p7), %v1955_v8, %s2196_s15  ;;  %606 = vrot.lane.b32.xlu0 (!%p531_p7), %v590_v9, %s2197_s16  ;;  %v1956_v10 = vld [vmem:[%s2430_s14 + $0xa0] sm:$0xff] (!%p531_p7)  ;;  %v591_v11 = vld [vmem:[%s2430_s14 + $0x10] sm:$0xff] (!%p531_p7)  ;;  %vm1436_vm15 = vcmask (!%p531_p7), 261312   ;;  %s2207_s21 = smov (!%p531_p7), 40   ;;  %s2208_s26 = smov (!%p531_p7), 64  }
  0x41   : > { %v690_v12 = vld [vmem:[%s2430_s14 + $0x11] sm:$0xff] (!%p531_p7)  ;;  %v689_v13 = vld [vmem:[%s2430_s14 + $0x1] sm:$0xff] (!%p531_p7) }
  0x42   : > { %v592_v14 = vld [vmem:[%s2430_s14 + $0x20] sm:$0xff]  ;;  %v1964_v17 = vld [vmem:[%s2430_s14 + $0x130] sm:$0xff]  ;;  %2114 = vmatpush3.bf16.msra.mxu0 %v2111_v35 }
  0x43   : > { %v1963_v15 = vld [vmem:[%s2430_s14 + $0x120] sm:$0xff]  ;;  %v1947_v18 = vld [vmem:[%s2430_s14 + $0x1b0] sm:$0xff]  ;;  %2063 = vmatprep.subr.msk.mxu0 %vm1024_vm1, %v998_v37 }
  0x44   : > { %658 = vrot.lane.b32.xlu1 %v1956_v10, %s2196_s15  ;;  %608 = vrot.lane.b32.xlu0 %v591_v11, %s2197_s16  ;;  %v1971_v16 = vld [vmem:[%s2430_s14 + $0x121] sm:$0xff]  ;;  %v1949_v20 = vld [vmem:[%s2430_s14 + $0x1d0] sm:$0xff]  ;;  %582 = vst.msk [vmem:[#allocation2] sm:$0xff] %vm581_vm0, %v1947_v18 }
  0x45   : > { %v1948_v19 = vld [vmem:[%s2430_s14 + $0x1c0] sm:$0xff]  ;;  %584 = vst.msk [vmem:[#allocation2 + $0x10] sm:$0xff] %vm581_vm0, %v1949_v20  ;;  %v1957_v22 = vld [vmem:[%s2430_s14 + $0xb0] sm:$0xff] }
  0x46   : > { %583 = vst.msk [vmem:[#allocation2 + $0x8] sm:$0xff] %vm581_vm0, %v1948_v19  ;;  %v1950_v21 = vld [vmem:[%s2430_s14 + $0x1e0] sm:$0xff]  ;;  %v593_v23 = vld [vmem:[%s2430_s14 + $0x30] sm:$0xff]  ;;  %2064 = vmatpush3.msk.msra.mxu0 %vm1024_vm1, %v998_v37  ;;  %vm1485_vm1 = vcmask 326912  }
  0x47   : > { %585 = vst.msk [vmem:[#allocation2 + $0x18] sm:$0xff] %vm581_vm0, %v1950_v21  ;;  %v1972_v24 = vld [vmem:[%s2430_s14 + $0x131] sm:$0xff]  ;;  %v691_v25 = vld [vmem:[%s2430_s14 + $0x21] sm:$0xff] }
  0x48   : > { %707 = vrot.lane.b32.xlu1 %v690_v12, %s2198_s17  ;;  %705 = vrot.lane.b32.xlu0 %v689_v13, %s2198_s17  ;;  %v1958_v26 = vld [vmem:[%s2430_s14 + $0xc0] sm:$0xff]  ;;  %v1951_v27 = vld [vmem:[%s2430_s14 + $0x1f0] sm:$0xff] }
  0x49   : > { %586 = vst.msk [vmem:[#allocation2 + $0x20] sm:$0xff] %vm581_vm0, %v1951_v27  ;;  %v1965_v31 = vld [vmem:[%s2430_s14 + $0x140] sm:$0xff]  ;;  %v692_v32 = vld [vmem:[%s2430_s14 + $0x31] sm:$0xff] }
  0x4a   : > { %v1952_v36 = vld [vmem:[%s2430_s14 + $0x200] sm:$0xff]  ;;  %v1966_v38 = vld [vmem:[%s2430_s14 + $0x150] sm:$0xff] }
  0x4b   : > { %587 = vst.msk [vmem:[#allocation2 + $0x28] sm:$0xff] %vm581_vm0, %v1952_v36  ;;  %v594_v39 = vld [vmem:[%s2430_s14 + $0x40] sm:$0xff]  ;;  %v1959_v41 = vld [vmem:[%s2430_s14 + $0xd0] sm:$0xff] }
  0x4c   : > { %610 = vrot.lane.b32.xlu1 %v592_v14, %s2197_s16  ;;  %755 = vrot.lane.b32.xlu0 %v1963_v15, %s2199_s18  ;;  %v1973_v40 = vld [vmem:[%s2430_s14 + $0x141] sm:$0xff]  ;;  %v595_v42 = vld [vmem:[%s2430_s14 + $0x50] sm:$0xff] }
  0x4d   : > { %v1974_v43 = vld [vmem:[%s2430_s14 + $0x151] sm:$0xff]  ;;  %v693_v44 = vld [vmem:[%s2430_s14 + $0x41] sm:$0xff] }
  0x4e   : > { %v1960_v45 = vld [vmem:[%s2430_s14 + $0xe0] sm:$0xff]  ;;  %v1953_v46 = vld [vmem:[%s2430_s14 + $0x210] sm:$0xff] }
  0x4f   : > { %588 = vst.msk [vmem:[#allocation2 + $0x30] sm:$0xff] %vm581_vm0, %v1953_v46  ;;  %v1967_v47 = vld [vmem:[%s2430_s14 + $0x160] sm:$0xff]  ;;  %v694_v48 = vld [vmem:[%s2430_s14 + $0x51] sm:$0xff] }
  0x50   : > { %804 = vrot.lane.b32.xlu1 %v1971_v16, %s2200_s19  ;;  %757 = vrot.lane.b32.xlu0 %v1964_v17, %s2199_s18  ;;  %v1954_v49 = vld [vmem:[%s2430_s14 + $0x220] sm:$0xff]  ;;  %v1968_v50 = vld [vmem:[%s2430_s14 + $0x170] sm:$0xff] }
  0x51   : > { %589 = vst.msk [vmem:[#allocation2 + $0x38] sm:$0xff] %vm581_vm0, %v1954_v49  ;;  %v596_v51 = vld [vmem:[%s2430_s14 + $0x60] sm:$0xff]  ;;  %v597_v53 = vld [vmem:[%s2430_s14 + $0x70] sm:$0xff]  ;;  %vm1387_vm0 = vcmask 195712  }
  0x52   : > { %v1975_v52 = vld [vmem:[%s2430_s14 + $0x161] sm:$0xff]  ;;  %v1961_v54 = vld [vmem:[%s2430_s14 + $0xf0] sm:$0xff] }
  0x53   : > { %v1976_v55 = vld [vmem:[%s2430_s14 + $0x171] sm:$0xff]  ;;  %v1962_v56 = vld [vmem:[%s2430_s14 + $0x100] sm:$0xff] }
  0x54   : > { %660 = vrot.lane.b32.xlu1 %v1957_v22, %s2196_s15  ;;  %612 = vrot.lane.b32.xlu0 %v593_v23, %s2197_s16  ;;  %v695_v57 = vld [vmem:[%s2430_s14 + $0x61] sm:$0xff]  ;;  %v696_v58 = vld [vmem:[%s2430_s14 + $0x71] sm:$0xff] }
  0x55   : > { %v1969_v59 = vld [vmem:[%s2430_s14 + $0x180] sm:$0xff]  ;;  %v1970_v60 = vld [vmem:[%s2430_s14 + $0x190] sm:$0xff] }
  0x56   : > { %v1977_v61 = vld [vmem:[%s2430_s14 + $0x181] sm:$0xff]  ;;  %v1978_v62 = vld [vmem:[%s2430_s14 + $0x191] sm:$0xff] }
  0x57   : > { %v1986_v63 = vld [vmem:[%s2430_s14 + $0x80] sm:$0xff]  ;;  %v1994_v2 = vld [vmem:[%s2430_s14 + $0x110] sm:$0xff] }
  0x58   : > { %854 = vrot.lane.b32.xlu1 %v591_v11, %s2201_s20  ;;  %806 = vrot.lane.b32.xlu0 %v1972_v24, %s2200_s19  ;;  %v2002_v5 = vld [vmem:[%s2430_s14 + $0x81] sm:$0xff]  ;;  %s2205_s14 = smov 48  }
  0x5c   : > { %709 = vrot.lane.b32.xlu1 %v691_v25, %s2198_s17  ;;  %662 = vrot.lane.b32.xlu0 %v1958_v26, %s2196_s15 }
  0x60   : > { %904 = vrot.lane.b32.xlu1 %v1956_v10, %s2202_s30  ;;  %856 = vrot.lane.b32.xlu0 %v592_v14, %s2201_s20 }
  0x64   : > { %759 = vrot.lane.b32.xlu1 %v1965_v31, %s2199_s18  ;;  %711 = vrot.lane.b32.xlu0 %v692_v32, %s2198_s17 }
  0x68   : > { %953 = vrot.lane.b32.xlu1 %v690_v12, %s2203_s13  ;;  %906 = vrot.lane.b32.xlu0 %v1957_v22, %s2202_s30 }
  0x6c   : > { %761 = vrot.lane.b32.xlu1 %v1966_v38, %s2199_s18  ;;  %614 = vrot.lane.b32.xlu0 %v594_v39, %s2197_s16 }
  0x70   : > { %955 = vrot.lane.b32.xlu1 %v691_v25, %s2203_s13  ;;  %808 = vrot.lane.b32.xlu0 %v1973_v40, %s2200_s19 }
  0x74   : > { %664 = vrot.lane.b32.xlu1 %v1959_v41, %s2196_s15  ;;  %616 = vrot.lane.b32.xlu0 %v595_v42, %s2197_s16 }
  0x78   : > { %858 = vrot.lane.b32.xlu1 %v593_v23, %s2201_s20  ;;  %810 = vrot.lane.b32.xlu0 %v1974_v43, %s2200_s19 }
  0x7c   : > { %713 = vrot.lane.b32.xlu1 %v693_v44, %s2198_s17  ;;  %666 = vrot.lane.b32.xlu0 %v1960_v45, %s2196_s15 }
  0x80   : > { %908 = vrot.lane.b32.xlu1 %v1958_v26, %s2202_s30  ;;  %860 = vrot.lane.b32.xlu0 %v594_v39, %s2201_s20 }
  0x84   : > { %763 = vrot.lane.b32.xlu1 %v1967_v47, %s2199_s18  ;;  %715 = vrot.lane.b32.xlu0 %v694_v48, %s2198_s17 }
  0x88   : > { %957 = vrot.lane.b32.xlu1 %v692_v32, %s2203_s13  ;;  %910 = vrot.lane.b32.xlu0 %v1959_v41, %s2202_s30 }
  0x8c   : > { %765 = vrot.lane.b32.xlu1 %v1968_v50, %s2199_s18  ;;  %618 = vrot.lane.b32.xlu0 %v596_v51, %s2197_s16 }
  0x90   : > { %959 = vrot.lane.b32.xlu1 %v693_v44, %s2203_s13  ;;  %812 = vrot.lane.b32.xlu0 %v1975_v52, %s2200_s19 }
  0x94   : > { %620 = vrot.lane.b32.xlu0 %v597_v53, %s2197_s16  ;;  %668 = vrot.lane.b32.xlu1 %v1961_v54, %s2196_s15  ;;  %s2206_s16 = smov 56  }
  0x98   : > { %814 = vrot.lane.b32.xlu0 %v1976_v55, %s2200_s19  ;;  %862 = vrot.lane.b32.xlu1 %v595_v42, %s2201_s20 }
  0x9c   : > { %670 = vrot.lane.b32.xlu0 %v1962_v56, %s2196_s15  ;;  %717 = vrot.lane.b32.xlu1 %v695_v57, %s2198_s17 }
  0xa0   : > { %864 = vrot.lane.b32.xlu0 %v596_v51, %s2201_s20  ;;  %912 = vrot.lane.b32.xlu1 %v1960_v45, %s2202_s30 }
  0xa4   : > { %719 = vrot.lane.b32.xlu0 %v696_v58, %s2198_s17  ;;  %767 = vrot.lane.b32.xlu1 %v1969_v59, %s2199_s18 }
  0xa8   : > { %914 = vrot.lane.b32.xlu0 %v1961_v54, %s2202_s30  ;;  %961 = vrot.lane.b32.xlu1 %v694_v48, %s2203_s13 }
  0xac   : > { %769 = vrot.lane.b32.xlu0 %v1970_v60, %s2199_s18  ;;  %816 = vrot.lane.b32.xlu1 %v1977_v61, %s2200_s19 }
  0xb0   : > { %963 = vrot.lane.b32.xlu0 %v695_v57, %s2203_s13  ;;  %818 = vrot.lane.b32.xlu1 %v1978_v62, %s2200_s19 }
  0xb2   : > { %v657_v0 = vpop.permute.xlu1 %656  ;;  %v607_v1 = vpop.permute.xlu0 %606 }
  0xb3   : > { %631 = vst.msk [vmem:[#allocation2] sm:$0xff] %vm630_vm2, %v607_v1 }
  0xb4   : > { %681 = vst.msk [vmem:[#allocation2] sm:$0xff] %vm680_vm3, %v657_v0  ;;  %866 = vrot.lane.b32.xlu0 %v597_v53, %s2201_s20  ;;  %868 = vrot.lane.b32.xlu1 %v1986_v63, %s2201_s20 }
  0xb6   : > { %v659_v3 = vpop.permute.xlu1 %658  ;;  %v609_v4 = vpop.permute.xlu0 %608 }
  0xb7   : > { %632 = vst.msk [vmem:[#allocation2 + $0x8] sm:$0xff] %vm630_vm2, %v609_v4 }
  0xb8   : > { %682 = vst.msk [vmem:[#allocation2 + $0x8] sm:$0xff] %vm680_vm3, %v659_v3  ;;  %916 = vrot.lane.b32.xlu0 %v1962_v56, %s2202_s30  ;;  %918 = vrot.lane.b32.xlu1 %v1994_v2, %s2202_s30 }
  0xba   : > { %v708_v6 = vpop.permute.xlu1 %707  ;;  %v706_v7 = vpop.permute.xlu0 %705 }
  0xbb   : > { %731 = vst.msk [vmem:[#allocation2 + $0x8] sm:$0xff] %vm729_vm4, %v708_v6  ;;  %730 = vst.msk [vmem:[#allocation2] sm:$0xff] %vm729_vm4, %v706_v7 }
  0xbc   : > { %965 = vrot.lane.b32.xlu0 %v696_v58, %s2203_s13  ;;  %967 = vrot.lane.b32.xlu1 %v2002_v5, %s2203_s13 }
  0xbe   : > { %v611_v8 = vpop.permute.xlu1 %610  ;;  %v756_v9 = vpop.permute.xlu0 %755 }
  0xbf   : > { %633 = vst.msk [vmem:[#allocation2 + $0x10] sm:$0xff] %vm630_vm2, %v611_v8 }
  0xc0   : > { %780 = vst.msk [vmem:[#allocation2] sm:$0xff] %vm779_vm5, %v756_v9 }
  0xc2   : > { %v805_v10 = vpop.permute.xlu1 %804  ;;  %v758_v11 = vpop.permute.xlu0 %757 }
  0xc3   : > { %829 = vst.msk [vmem:[#allocation2] sm:$0xff] %vm828_vm6, %v805_v10  ;;  %v2204_v10 = vmov 0.0  }
  0xc4   : > { %781 = vst.msk [vmem:[#allocation2 + $0x8] sm:$0xff] %vm779_vm5, %v758_v11  ;;  %v1223_v11 = vrot.slane %v2204_v10, 7 }
  0xc6   : > { %v661_v12 = vpop.permute.xlu1 %660  ;;  %v613_v13 = vpop.permute.xlu0 %612 }
  0xc7   : > { %683 = vst.msk [vmem:[#allocation2 + $0x10] sm:$0xff] %vm680_vm3, %v661_v12  ;;  %v1242_v12 = vsel %vm1241_vm11, 0.0, %v1223_v11 }
  0xc8   : > { %634 = vst.msk [vmem:[#allocation2 + $0x18] sm:$0xff] %vm630_vm2, %v613_v13  ;;  %v1251_v13 = vsel %vm1241_vm11, %v1223_v11, 0.0 }
  0xc9   : > { %1260 = vst.msk [vmem:[#allocation3] sm:$0xff] %vm1205_vm12, %v1242_v12  ;;  %1279 = vst.msk [vmem:[#allocation3 + $0x90] sm:$0xff] %vm1205_vm12, %v1242_v12  ;;  %v1705_v12 = vld [vmem:[%s2969_s3 + $0x30] sm:$0xff] }
  0xca   : > { %v855_v14 = vpop.permute.xlu1 %854  ;;  %v807_v15 = vpop.permute.xlu0 %806  ;;  %1262 = vst.msk [vmem:[#allocation3 + $0x8] sm:$0x3] %vm1261_vm13, %v1251_v13  ;;  %1280 = vst.msk [vmem:[#allocation3 + $0x98] sm:$0x3] %vm1261_vm13, %v1251_v13  ;;  %v1706_v13 = vld [vmem:[%s2969_s3 + $0x38] sm:$0xff] }
  0xcb   : > { %879 = vst.msk [vmem:[#allocation2] sm:$0xff] %vm878_vm7, %v855_v14 }
  0xcc   : > { %830 = vst.msk [vmem:[#allocation2 + $0x8] sm:$0xff] %vm828_vm6, %v807_v15 }
  0xce   : > { %v710_v16 = vpop.permute.xlu1 %709  ;;  %v663_v17 = vpop.permute.xlu0 %662 }
  0xcf   : > { %732 = vst.msk [vmem:[#allocation2 + $0x10] sm:$0xff] %vm729_vm4, %v710_v16 }
  0xd0   : > { %684 = vst.msk [vmem:[#allocation2 + $0x18] sm:$0xff] %vm680_vm3, %v663_v17  ;;  %v1298_v14 = vld [vmem:[#allocation3] sm:$0xff]  ;;  %v1551_v15 = vld [vmem:[#allocation3 + $0x90] sm:$0xff] }
  0xd1   : > { %1314 = vrot.lane.b32.xlu0 %v1298_v14, %s2196_s15  ;;  %v1347_v16 = vld [vmem:[#allocation3 + $0x1] sm:$0xff]  ;;  %1574 = vrot.lane.b32.xlu1 %v1551_v15, %s2205_s14  ;;  %v1600_v17 = vld [vmem:[#allocation3 + $0x91] sm:$0xff] }
  0xd2   : > { %v905_v18 = vpop.permute.xlu1 %904  ;;  %v857_v19 = vpop.permute.xlu0 %856 }
  0xd3   : > { %929 = vst.msk [vmem:[#allocation2] sm:$0xff] %vm928_vm8, %v905_v18  ;;  %v1396_v18 = vld [vmem:[#allocation3 + $0x2] sm:$0xff] }
  0xd4   : > { %880 = vst.msk [vmem:[#allocation2 + $0x8] sm:$0xff] %vm878_vm7, %v857_v19  ;;  %v2656_v19 = vld [vmem:[%s2968_s2] ss:$0 sm:$0xff] }
  0xd5   : > { %1363 = vrot.lane.b32.xlu0 %v1347_v16, %s2199_s18  ;;  %1623 = vrot.lane.b32.xlu1 %v1600_v17, %s2206_s16  ;;  %v2127_v16 = vpack.c.bf16 %v1706_v13, %v1705_v12 }
  0xd6   : > { %v760_v20 = vpop.permute.xlu1 %759  ;;  %v712_v21 = vpop.permute.xlu0 %711 }
  0xd7   : > { %782 = vst.msk [vmem:[#allocation2 + $0x10] sm:$0xff] %vm779_vm5, %v760_v20 }
  0xd8   : > { %733 = vst.msk [vmem:[#allocation2 + $0x18] sm:$0xff] %vm729_vm4, %v712_v21 }
  0xd9   : > { %1412 = vrot.lane.b32.xlu0 %v1396_v18, %s2201_s20 }
  0xda   : > { %v954_v22 = vpop.permute.xlu1 %953  ;;  %v907_v23 = vpop.permute.xlu0 %906 }
  0xdb   : > { %978 = vst.msk [vmem:[#allocation2] sm:$0xff] %vm977_vm9, %v954_v22 }
  0xdc   : > { %930 = vst.msk [vmem:[#allocation2 + $0x8] sm:$0xff] %vm928_vm8, %v907_v23 }
  0xde   : > { %v762_v24 = vpop.permute.xlu1 %761  ;;  %v615_v25 = vpop.permute.xlu0 %614 }
  0xdf   : > { %783 = vst.msk [vmem:[#allocation2 + $0x18] sm:$0xff] %vm779_vm5, %v762_v24 }
  0xe0   : > { %635 = vst.msk [vmem:[#allocation2 + $0x20] sm:$0xff] %vm630_vm2, %v615_v25 }
  0xe2   : > { %v956_v26 = vpop.permute.xlu1 %955  ;;  %v809_v27 = vpop.permute.xlu0 %808  ;;  %v986_v28 = vld [vmem:[#allocation2] sm:$0xff] }
  0xe3   : > { %979 = vst.msk [vmem:[#allocation2 + $0x8] sm:$0xff] %vm977_vm9, %v956_v26  ;;  %2065 = vmatprep.mubr.msk.f32.mxu0 %vm999_vm10, %v986_v28 }
  0xe4   : > { %831 = vst.msk [vmem:[#allocation2 + $0x10] sm:$0xff] %vm828_vm6, %v809_v27 }
  0xe6   : > { %v665_v29 = vpop.permute.xlu1 %664  ;;  %v617_v30 = vpop.permute.xlu0 %616 }
  0xe7   : > { %685 = vst.msk [vmem:[#allocation2 + $0x20] sm:$0xff] %vm680_vm3, %v665_v29 }
  0xe8   : > { %636 = vst.msk [vmem:[#allocation2 + $0x28] sm:$0xff] %vm630_vm2, %v617_v30 }
  0xea   : > { %v859_v31 = vpop.permute.xlu1 %858  ;;  %v811_v32 = vpop.permute.xlu0 %810  ;;  %v987_v33 = vld [vmem:[#allocation2 + $0x8] sm:$0xff] }
  0xeb   : > { %881 = vst.msk [vmem:[#allocation2 + $0x10] sm:$0xff] %vm878_vm7, %v859_v31  ;;  %2066 = vmatmul.mubr.msk.f32.vlgmr.msra.gmra.mrb[0].mxu0 %vm999_vm10, %v987_v33 }
  0xec   : > { %832 = vst.msk [vmem:[#allocation2 + $0x18] sm:$0xff] %vm828_vm6, %v811_v32 }
  0xee   : > { %v714_v34 = vpop.permute.xlu1 %713  ;;  %v667_v35 = vpop.permute.xlu0 %666 }
  0xef   : > { %734 = vst.msk [vmem:[#allocation2 + $0x20] sm:$0xff] %vm729_vm4, %v714_v34 }
  0xf0   : > { %686 = vst.msk [vmem:[#allocation2 + $0x28] sm:$0xff] %vm680_vm3, %v667_v35 }
  0xf2   : > { %v909_v36 = vpop.permute.xlu1 %908  ;;  %v861_v37 = vpop.permute.xlu0 %860 }
  0xf3   : > { %931 = vst.msk [vmem:[#allocation2 + $0x10] sm:$0xff] %vm928_vm8, %v909_v36 }
  0xf4   : > { %882 = vst.msk [vmem:[#allocation2 + $0x18] sm:$0xff] %vm878_vm7, %v861_v37 }
  0xf6   : > { %v764_v38 = vpop.permute.xlu1 %763  ;;  %v716_v39 = vpop.permute.xlu0 %715 }
  0xf7   : > { %784 = vst.msk [vmem:[#allocation2 + $0x20] sm:$0xff] %vm779_vm5, %v764_v38 }
  0xf8   : > { %735 = vst.msk [vmem:[#allocation2 + $0x28] sm:$0xff] %vm729_vm4, %v716_v39 }
  0xfa   : > { %v958_v40 = vpop.permute.xlu1 %957  ;;  %v911_v41 = vpop.permute.xlu0 %910 }
  0xfb   : > { %980 = vst.msk [vmem:[#allocation2 + $0x10] sm:$0xff] %vm977_vm9, %v958_v40 }
  0xfc   : > { %932 = vst.msk [vmem:[#allocation2 + $0x18] sm:$0xff] %vm928_vm8, %v911_v41 }
  0xfe   : > { %v766_v42 = vpop.permute.xlu1 %765  ;;  %v619_v43 = vpop.permute.xlu0 %618 }
  0xff   : > { %785 = vst.msk [vmem:[#allocation2 + $0x28] sm:$0xff] %vm779_vm5, %v766_v42 }
 0x100   : > { %637 = vst.msk [vmem:[#allocation2 + $0x30] sm:$0xff] %vm630_vm2, %v619_v43 }
 0x102   : > { %v960_v44 = vpop.permute.xlu1 %959  ;;  %v813_v45 = vpop.permute.xlu0 %812  ;;  %v988_v46 = vld [vmem:[#allocation2 + $0x10] sm:$0xff] }
 0x103   : > { %981 = vst.msk [vmem:[#allocation2 + $0x18] sm:$0xff] %vm977_vm9, %v960_v44  ;;  %2068 = vmatprep.mubr.msk.f32.mxu0 %vm999_vm10, %v988_v46 }
 0x104   : > { %833 = vst.msk [vmem:[#allocation2 + $0x20] sm:$0xff] %vm828_vm6, %v813_v45 }
 0x106   : > { %v621_v47 = vpop.permute.xlu0 %620  ;;  %v669_v48 = vpop.permute.xlu1 %668 }
 0x107   : > { %638 = vst.msk [vmem:[#allocation2 + $0x38] sm:$0xff] %vm630_vm2, %v621_v47  ;;  %vm1534_vm2 = vcmask 392512  }
 0x108   : > { %687 = vst.msk [vmem:[#allocation2 + $0x30] sm:$0xff] %vm680_vm3, %v669_v48 }
 0x10a   : > { %v815_v49 = vpop.permute.xlu0 %814  ;;  %v989_v50 = vld [vmem:[#allocation2 + $0x18] sm:$0xff]  ;;  %v863_v51 = vpop.permute.xlu1 %862 }
 0x10b   : > { %834 = vst.msk [vmem:[#allocation2 + $0x28] sm:$0xff] %vm828_vm6, %v815_v49  ;;  %2069 = vmatmul.mubr.msk.f32.gmra.mrb[2].mxu0 %vm999_vm10, %v989_v50 }
 0x10c   : > { %883 = vst.msk [vmem:[#allocation2 + $0x20] sm:$0xff] %vm878_vm7, %v863_v51 }
 0x10e   : > { %v671_v52 = vpop.permute.xlu0 %670  ;;  %v718_v53 = vpop.permute.xlu1 %717 }
 0x10f   : > { %688 = vst.msk [vmem:[#allocation2 + $0x38] sm:$0xff] %vm680_vm3, %v671_v52  ;;  %vm1584_vm3 = vcmask 458112  }
 0x110   : > { %736 = vst.msk [vmem:[#allocation2 + $0x30] sm:$0xff] %vm729_vm4, %v718_v53 }
 0x112   : > { %v865_v54 = vpop.permute.xlu0 %864  ;;  %v913_v55 = vpop.permute.xlu1 %912 }
 0x113   : > { %884 = vst.msk [vmem:[#allocation2 + $0x28] sm:$0xff] %vm878_vm7, %v865_v54 }
 0x114   : > { %933 = vst.msk [vmem:[#allocation2 + $0x20] sm:$0xff] %vm928_vm8, %v913_v55 }
 0x116   : > { %v720_v56 = vpop.permute.xlu0 %719  ;;  %v768_v57 = vpop.permute.xlu1 %767 }
 0x117   : > { %737 = vst.msk [vmem:[#allocation2 + $0x38] sm:$0xff] %vm729_vm4, %v720_v56  ;;  %vm1633_vm4 = vcmask 523712  }
 0x118   : > { %786 = vst.msk [vmem:[#allocation2 + $0x30] sm:$0xff] %vm779_vm5, %v768_v57 }
 0x11a   : > { %v915_v58 = vpop.permute.xlu0 %914  ;;  %v962_v59 = vpop.permute.xlu1 %961 }
 0x11b   : > { %934 = vst.msk [vmem:[#allocation2 + $0x28] sm:$0xff] %vm928_vm8, %v915_v58  ;;  %v1699_v58 = vld [vmem:[%s2969_s3] sm:$0xff] }
 0x11c   : > { %982 = vst.msk [vmem:[#allocation2 + $0x20] sm:$0xff] %vm977_vm9, %v962_v59  ;;  %v1700_v59 = vld [vmem:[%s2969_s3 + $0x8] sm:$0xff] }
 0x11e   : > { %v770_v60 = vpop.permute.xlu0 %769  ;;  %v817_v61 = vpop.permute.xlu1 %816 }
 0x11f   : > { %787 = vst.msk [vmem:[#allocation2 + $0x38] sm:$0xff] %vm779_vm5, %v770_v60  ;;  %v2115_v60 = vpack.c.bf16 %v1700_v59, %v1699_v58  ;;  %v2013_v59 = vld [vmem:[%s2971_s5] ss:$0 sm:$0xff]  ;;  %vm1682_vm5 = vcmask 589312  }
 0x120   : > { %835 = vst.msk [vmem:[#allocation2 + $0x30] sm:$0xff] %vm828_vm6, %v817_v61  ;;  %v1701_v61 = vld [vmem:[%s2969_s3 + $0x10] sm:$0xff] }
 0x121   : > { %2116 = vmatprep.subr.bf16.mxu1 %v2115_v60 }
 0x122   : > { %v964_v62 = vpop.permute.xlu0 %963  ;;  %v819_v0 = vpop.permute.xlu1 %818  ;;  %2118 = vmatpush3.bf16.msra.mxu1 %v2115_v60 }
 0x123   : > { %v990_v63 = vld [vmem:[#allocation2 + $0x20] sm:$0xff]  ;;  %983 = vst.msk [vmem:[#allocation2 + $0x28] sm:$0xff] %vm977_vm9, %v964_v62  ;;  %v1702_v62 = vld [vmem:[%s2969_s3 + $0x18] sm:$0xff] }
 0x124   : > { %2071 = vmatprep.mubr.msk.f32.mxu0 %vm999_vm10, %v990_v63  ;;  %836 = vst.msk [vmem:[#allocation2 + $0x38] sm:$0xff] %vm828_vm6, %v819_v0  ;;  %v2119_v63 = vpack.c.bf16 %v1702_v62, %v1701_v61  ;;  %vm1715_vm6 = vcmask 588800  }
 0x126   : > { %v867_v1 = vpop.permute.xlu0 %866  ;;  %v869_v2 = vpop.permute.xlu1 %868  ;;  %2120 = vmatprep.subr.bf16.mxu1 %v2119_v63 }
 0x127   : > { %885 = vst.msk [vmem:[#allocation2 + $0x30] sm:$0xff] %vm878_vm7, %v867_v1  ;;  %886 = vst.msk [vmem:[#allocation2 + $0x38] sm:$0xff] %vm878_vm7, %v869_v2  ;;  %2122 = vmatpush3.bf16.msra.mxu1 %v2119_v63 }
 0x12a   : > { %v991_v3 = vld [vmem:[#allocation2 + $0x28] sm:$0xff]  ;;  %v917_v4 = vpop.permute.xlu0 %916  ;;  %v919_v5 = vpop.permute.xlu1 %918 }
 0x12b   : > { %2072 = vmatmul.mubr.msk.f32.gmra.mrb[4].mxu0 %vm999_vm10, %v991_v3  ;;  %935 = vst.msk [vmem:[#allocation2 + $0x30] sm:$0xff] %vm928_vm8, %v917_v4  ;;  %936 = vst.msk [vmem:[#allocation2 + $0x38] sm:$0xff] %vm928_vm8, %v919_v5  ;;  %v1703_v4 = vld [vmem:[%s2969_s3 + $0x20] sm:$0xff]  ;;  %v1704_v5 = vld [vmem:[%s2969_s3 + $0x28] sm:$0xff] }
 0x12e   : > { %v966_v6 = vpop.permute.xlu0 %965  ;;  %v968_v7 = vpop.permute.xlu1 %967 }
 0x12f   : > { %984 = vst.msk [vmem:[#allocation2 + $0x30] sm:$0xff] %vm977_vm9, %v966_v6  ;;  %985 = vst.msk [vmem:[#allocation2 + $0x38] sm:$0xff] %vm977_vm9, %v968_v7 }
 0x136   : > { %v992_v8 = vld [vmem:[#allocation2 + $0x30] sm:$0xff]  ;;  %v993_v9 = vld [vmem:[#allocation2 + $0x38] sm:$0xff] }
 0x137   : > { %2074 = vmatprep.mubr.msk.f32.mxu0 %vm999_vm10, %v992_v8  ;;  %v2123_v8 = vpack.c.bf16 %v1704_v5, %v1703_v4 }
 0x138   : > { %2075 = vmatmul.mubr.msk.f32.gmra.mrb[6].mxu0 %vm999_vm10, %v993_v9 }
 0x139   : > { %2124 = vmatprep.subr.bf16.mxu1 %v2123_v8 }
 0x13a   : > { %2126 = vmatpush3.bf16.msra.mxu1 %v2123_v8 }
 0x13b   : > { %2128 = vmatprep.subr.bf16.mxu1 %v2127_v16 }
 0x13e   : > { %2130 = vmatpush3.bf16.msra.mxu1 %v2127_v16 }
 0x143   : > { %v1315_v30 = vpop.permute.xlu0 %1314 }
 0x147   : > { %v1364_v33 = vpop.permute.xlu0 %1363 }
 0x14b   : > { %v1413_v38 = vpop.permute.xlu0 %1412 }
 0x1be   : > { %v2658_v20 = vpop.f32.mrb[0].mxu0 }
 0x1bf   : > { %v1141_v21 = vadd.f32 %v2658_v20, %v2656_v19  ;;  %v2662_v22 = vpop.f32.mrb[1].mxu0 }
 0x1c0   : > { %v1140_v23 = vadd.f32 %v2656_v19, %v2662_v22 }
 0x1c1   : > { %v1149_v24 = vmax.f32 %v1141_v21, 0.0  ;;  %v1707_v21 = vld [vmem:[%s2969_s3 + $0x40] sm:$0xff] }
 0x1c2   : > { %v1148_v25 = vmax.f32 %v1140_v23, 0.0  ;;  %2093 = vmatprep.subr.mxu1 %v1707_v21 }
 0x1c3   : > { %v1225_v26 = vrot.slane %v1149_v24, 7  ;;  %2094 = vmatpush3.msra.mxu1 %v1707_v21 }
 0x1c4   : > { %v1224_v27 = vrot.slane %v1148_v25, 7 }
 0x1c5   : > { %v1244_v28 = vsel %vm1241_vm11, 0.0, %v1225_v26  ;;  %v1253_v29 = vsel %vm1241_vm11, %v1225_v26, 0.0 }
 0x1c6   : > { %1265 = vst.msk [vmem:[#allocation3 + $0x20] sm:$0xff] %vm1205_vm12, %v1244_v28  ;;  %v1243_v31 = vsel %vm1241_vm11, 0.0, %v1224_v27  ;;  %v1252_v32 = vsel %vm1241_vm11, %v1224_v27, 0.0 }
 0x1c7   : > { %1266 = vst.msk [vmem:[#allocation3 + $0x28] sm:$0x3] %vm1261_vm13, %v1253_v29  ;;  %1264 = vst.msk [vmem:[#allocation3 + $0x18] sm:$0x3] %vm1261_vm13, %v1252_v32 }
 0x1c8   : > { %1263 = vst.msk [vmem:[#allocation3 + $0x10] sm:$0xff] %vm1205_vm12, %v1243_v31 }
 0x1cd   : > { %v1446_v34 = vld [vmem:[#allocation3 + $0x20] sm:$0xff] }
 0x1ce   : > { %v1349_v35 = vld [vmem:[#allocation3 + $0x21] sm:$0xff]  ;;  %1463 = vrot.lane.b32.xlu0 %v1446_v34, %s2203_s13  ;;  %1318 = vrot.lane.b32.xlu1 %v1446_v34, %s2196_s15 }
 0x1cf   : > { %v1348_v36 = vld [vmem:[#allocation3 + $0x11] sm:$0xff]  ;;  %1291 = vst.msk [vmem:[#allocation4 + $0x8] sm:$0xff] %vm1205_vm12, %v1349_v35  ;;  %v1495_v37 = vld [vmem:[#allocation3 + $0x22] sm:$0xff] }
 0x1d0   : > { %1290 = vst.msk [vmem:[#allocation4] sm:$0xff] %vm1205_vm12, %v1348_v36  ;;  %v1445_v39 = vld [vmem:[#allocation3 + $0x10] sm:$0xff] }
 0x1d1   : > { %1339 = vst.msk [vmem:[#allocation4] sm:$0xff] %vm1338_vm14, %v1315_v30  ;;  %v1397_v52 = vld [vmem:[#allocation3 + $0x12] sm:$0xff] }
 0x1d2   : > { %1388 = vst.msk [vmem:[#allocation4] sm:$0xff] %vm1387_vm0, %v1364_v33  ;;  %1512 = vrot.lane.b32.xlu0 %v1495_v37, %s2207_s21  ;;  %1367 = vrot.lane.b32.xlu1 %v1349_v35, %s2199_s18 }
 0x1d3   : > { %1437 = vst.msk [vmem:[#allocation4] sm:$0xff] %vm1436_vm15, %v1413_v38 }
 0x1d6   : > { %1560 = vrot.lane.b32.xlu1 %v1446_v34, %s2205_s14  ;;  %1461 = vrot.lane.b32.xlu0 %v1445_v39, %s2203_s13 }
 0x1da   : > { %1416 = vrot.lane.b32.xlu1 %v1495_v37, %s2201_s20 }
 0x1de   : > { %1609 = vrot.lane.b32.xlu1 %v1349_v35, %s2206_s16  ;;  %v2687_v40 = vpop.f32.mrb[2].mxu0 }
 0x1df   : > { %v1143_v41 = vadd.f32 %v2687_v40, %v2656_v19  ;;  %v2691_v42 = vpop.f32.mrb[3].mxu0 }
 0x1e0   : > { %v1142_v43 = vadd.f32 %v2656_v19, %v2691_v42 }
 0x1e1   : > { %v1151_v44 = vmax.f32 %v1143_v41, 0.0 }
 0x1e2   : > { %v1150_v45 = vmax.f32 %v1142_v43, 0.0  ;;  %1658 = vrot.lane.b32.xlu1 %v1495_v37, %s2208_s26 }
 0x1e3   : > { %v1227_v46 = vrot.slane %v1151_v44, 7 }
 0x1e4   : > { %v1226_v47 = vrot.slane %v1150_v45, 7  ;;  %v2807_v45 = vpop.permute.xlu1 %1574 }
 0x1e5   : > { %v1246_v48 = vsel %vm1241_vm11, 0.0, %v1227_v46  ;;  %v1255_v49 = vsel %vm1241_vm11, %v1227_v46, 0.0 }
 0x1e6   : > { %1269 = vst.msk [vmem:[#allocation3 + $0x40] sm:$0xff] %vm1205_vm12, %v1246_v48  ;;  %v1245_v50 = vsel %vm1241_vm11, 0.0, %v1226_v47  ;;  %v1254_v51 = vsel %vm1241_vm11, %v1226_v47, 0.0  ;;  %1316 = vrot.lane.b32.xlu1 %v1445_v39, %s2196_s15 }
 0x1e7   : > { %1270 = vst.msk [vmem:[#allocation3 + $0x48] sm:$0x3] %vm1261_vm13, %v1255_v49  ;;  %1268 = vst.msk [vmem:[#allocation3 + $0x38] sm:$0x3] %vm1261_vm13, %v1254_v51 }
 0x1e8   : > { %1267 = vst.msk [vmem:[#allocation3 + $0x30] sm:$0xff] %vm1205_vm12, %v1245_v50  ;;  %v2813_v48 = vpop.permute.xlu1 %1623  ;;  %v1649_v50 = vld [vmem:[#allocation3 + $0x92] sm:$0xff] }
 0x1ea   : > { %1365 = vrot.lane.b32.xlu1 %v1348_v36, %s2199_s18 }
 0x1ed   : > { %v1302_v53 = vld [vmem:[#allocation3 + $0x40] sm:$0xff] }
 0x1ee   : > { %v1351_v54 = vld [vmem:[#allocation3 + $0x41] sm:$0xff]  ;;  %1414 = vrot.lane.b32.xlu1 %v1397_v52, %s2201_s20  ;;  %1322 = vrot.lane.b32.xlu0 %v1302_v53, %s2196_s15 }
 0x1ef   : > { %v1350_v55 = vld [vmem:[#allocation3 + $0x31] sm:$0xff]  ;;  %1293 = vst.msk [vmem:[#allocation4 + $0x18] sm:$0xff] %vm1205_vm12, %v1351_v54  ;;  %v1497_v56 = vld [vmem:[#allocation3 + $0x42] sm:$0xff] }
 0x1f0   : > { %1292 = vst.msk [vmem:[#allocation4 + $0x10] sm:$0xff] %vm1205_vm12, %v1350_v55  ;;  %v1301_v57 = vld [vmem:[#allocation3 + $0x30] sm:$0xff] }
 0x1f1   : > { %v1399_v7 = vld [vmem:[#allocation3 + $0x32] sm:$0xff] }
 0x1f2   : > { %1510 = vrot.lane.b32.xlu1 %v1397_v52, %s2207_s21  ;;  %1516 = vrot.lane.b32.xlu0 %v1497_v56, %s2207_s21 }
 0x1f6   : > { %1467 = vrot.lane.b32.xlu1 %v1302_v53, %s2203_s13  ;;  %1320 = vrot.lane.b32.xlu0 %v1301_v57, %s2196_s15 }
 0x1fa   : > { %1371 = vrot.lane.b32.xlu1 %v1351_v54, %s2199_s18  ;;  %1369 = vrot.lane.b32.xlu0 %v1350_v55, %s2199_s18 }
 0x1fe   : > { %1564 = vrot.lane.b32.xlu1 %v1302_v53, %s2205_s14  ;;  %1562 = vrot.lane.b32.xlu0 %v1301_v57, %s2205_s14  ;;  %v2730_v0 = vpop.f32.mrb[4].mxu0 }
 0x1ff   : > { %v1145_v1 = vadd.f32 %v2730_v0, %v2656_v19  ;;  %v2734_v2 = vpop.f32.mrb[5].mxu0 }
 0x200   : > { %v1144_v3 = vadd.f32 %v2656_v19, %v2734_v2 }
 0x201   : > { %v1153_v6 = vmax.f32 %v1145_v1, 0.0 }
 0x202   : > { %v1152_v9 = vmax.f32 %v1144_v3, 0.0  ;;  %1420 = vrot.lane.b32.xlu1 %v1497_v56, %s2201_s20  ;;  %1418 = vrot.lane.b32.xlu0 %v1399_v7, %s2201_s20 }
 0x203   : > { %v1229_v10 = vrot.slane %v1153_v6, 7 }
 0x204   : > { %v1228_v11 = vrot.slane %v1152_v9, 7 }
 0x205   : > { %v1248_v14 = vsel %vm1241_vm11, 0.0, %v1229_v10  ;;  %v1257_v15 = vsel %vm1241_vm11, %v1229_v10, 0.0 }
 0x206   : > { %1273 = vst.msk [vmem:[#allocation3 + $0x60] sm:$0xff] %vm1205_vm12, %v1248_v14  ;;  %v1247_v17 = vsel %vm1241_vm11, 0.0, %v1228_v11  ;;  %v1256_v18 = vsel %vm1241_vm11, %v1228_v11, 0.0  ;;  %1613 = vrot.lane.b32.xlu1 %v1351_v54, %s2206_s16  ;;  %1611 = vrot.lane.b32.xlu0 %v1350_v55, %s2206_s16 }
 0x207   : > { %1274 = vst.msk [vmem:[#allocation3 + $0x68] sm:$0x3] %vm1261_vm13, %v1257_v15  ;;  %1272 = vst.msk [vmem:[#allocation3 + $0x58] sm:$0x3] %vm1261_vm13, %v1256_v18 }
 0x208   : > { %1271 = vst.msk [vmem:[#allocation3 + $0x50] sm:$0xff] %vm1205_vm12, %v1247_v17 }
 0x20a   : > { %1662 = vrot.lane.b32.xlu1 %v1497_v56, %s2208_s26  ;;  %1514 = vrot.lane.b32.xlu0 %v1399_v7, %s2207_s21 }
 0x20b   : > { %v2767_v23 = vpop.f32.mrb[6].mxu0 }
 0x20c   : > { %v1147_v24 = vadd.f32 %v2767_v23, %v2656_v19  ;;  %v2771_v25 = vpop.f32.mrb[7].mxu0 }
 0x20d   : > { %v1304_v26 = vld [vmem:[#allocation3 + $0x60] sm:$0xff]  ;;  %v1146_v28 = vadd.f32 %v2656_v19, %v2771_v25 }
 0x20e   : > { %v1353_v27 = vld [vmem:[#allocation3 + $0x61] sm:$0xff]  ;;  %1465 = vrot.lane.b32.xlu1 %v1301_v57, %s2203_s13  ;;  %1326 = vrot.lane.b32.xlu0 %v1304_v26, %s2196_s15  ;;  %v1155_v30 = vmax.f32 %v1147_v24, 0.0 }
 0x20f   : > { %v1352_v29 = vld [vmem:[#allocation3 + $0x51] sm:$0xff]  ;;  %1295 = vst.msk [vmem:[#allocation4 + $0x28] sm:$0xff] %vm1205_vm12, %v1353_v27  ;;  %v1154_v31 = vmax.f32 %v1146_v28, 0.0  ;;  %v1499_v33 = vld [vmem:[#allocation3 + $0x62] sm:$0xff] }
 0x210   : > { %1294 = vst.msk [vmem:[#allocation4 + $0x20] sm:$0xff] %vm1205_vm12, %v1352_v29  ;;  %v1231_v32 = vrot.slane %v1155_v30, 7  ;;  %v1303_v38 = vld [vmem:[#allocation3 + $0x50] sm:$0xff] }
 0x211   : > { %v1230_v34 = vrot.slane %v1154_v31, 7  ;;  %v1401_v43 = vld [vmem:[#allocation3 + $0x52] sm:$0xff] }
 0x212   : > { %1660 = vrot.lane.b32.xlu1 %v1399_v7, %s2208_s26  ;;  %1520 = vrot.lane.b32.xlu0 %v1499_v33, %s2207_s21  ;;  %v1250_v19 = vsel %vm1241_vm11, 0.0, %v1231_v32  ;;  %v1259_v35 = vsel %vm1241_vm11, %v1231_v32, 0.0 }
 0x213   : > { %1277 = vst.msk [vmem:[#allocation3 + $0x80] sm:$0xff] %vm1205_vm12, %v1250_v19  ;;  %v1249_v36 = vsel %vm1241_vm11, 0.0, %v1230_v34  ;;  %v1258_v37 = vsel %vm1241_vm11, %v1230_v34, 0.0 }
 0x214   : > { %1278 = vst.msk [vmem:[#allocation3 + $0x88] sm:$0x3] %vm1261_vm13, %v1259_v35  ;;  %1276 = vst.msk [vmem:[#allocation3 + $0x78] sm:$0x3] %vm1261_vm13, %v1258_v37 }
 0x215   : > { %1275 = vst.msk [vmem:[#allocation3 + $0x70] sm:$0xff] %vm1205_vm12, %v1249_v36 }
 0x216   : > { %1471 = vrot.lane.b32.xlu1 %v1304_v26, %s2203_s13  ;;  %1324 = vrot.lane.b32.xlu0 %v1303_v38, %s2196_s15 }
 0x21a   : > { %1375 = vrot.lane.b32.xlu1 %v1353_v27, %s2199_s18  ;;  %1373 = vrot.lane.b32.xlu0 %v1352_v29, %s2199_s18  ;;  %v1452_v44 = vld [vmem:[#allocation3 + $0x80] sm:$0xff] }
 0x21b   : > { %v1599_v39 = vld [vmem:[#allocation3 + $0x81] sm:$0xff] }
 0x21c   : > { %v1354_v41 = vld [vmem:[#allocation3 + $0x71] sm:$0xff]  ;;  %1297 = vst.msk [vmem:[#allocation4 + $0x38] sm:$0xff] %vm1205_vm12, %v1599_v39  ;;  %v1501_v46 = vld [vmem:[#allocation3 + $0x82] sm:$0xff] }
 0x21d   : > { %1296 = vst.msk [vmem:[#allocation4 + $0x30] sm:$0xff] %vm1205_vm12, %v1354_v41  ;;  %v1451_v47 = vld [vmem:[#allocation3 + $0x70] sm:$0xff] }
 0x21e   : > { %1568 = vrot.lane.b32.xlu1 %v1304_v26, %s2205_s14  ;;  %1566 = vrot.lane.b32.xlu0 %v1303_v38, %s2205_s14  ;;  %v1500_v49 = vld [vmem:[#allocation3 + $0x72] sm:$0xff] }
 0x222   : > { %1424 = vrot.lane.b32.xlu1 %v1499_v33, %s2201_s20  ;;  %1422 = vrot.lane.b32.xlu0 %v1401_v43, %s2201_s20 }
 0x226   : > { %1617 = vrot.lane.b32.xlu1 %v1353_v27, %s2206_s16  ;;  %1615 = vrot.lane.b32.xlu0 %v1352_v29, %s2206_s16 }
 0x22a   : > { %1666 = vrot.lane.b32.xlu1 %v1499_v33, %s2208_s26  ;;  %1518 = vrot.lane.b32.xlu0 %v1401_v43, %s2207_s21 }
 0x22e   : > { %1469 = vrot.lane.b32.xlu1 %v1303_v38, %s2203_s13  ;;  %1475 = vrot.lane.b32.xlu0 %v1452_v44, %s2203_s13 }
 0x232   : > { %1664 = vrot.lane.b32.xlu1 %v1401_v43, %s2208_s26  ;;  %1572 = vrot.lane.b32.xlu0 %v1452_v44, %s2205_s14 }
 0x236   : > { %1524 = vrot.lane.b32.xlu1 %v1501_v46, %s2207_s21  ;;  %1621 = vrot.lane.b32.xlu0 %v1599_v39, %s2206_s16 }
 0x23a   : > { %1473 = vrot.lane.b32.xlu1 %v1451_v47, %s2203_s13  ;;  %1328 = vrot.lane.b32.xlu0 %v1451_v47, %s2196_s15 }
 0x23e   : > { %1522 = vrot.lane.b32.xlu1 %v1500_v49, %s2207_s21  ;;  %1377 = vrot.lane.b32.xlu0 %v1354_v41, %s2199_s18 }
 0x240   : > { %v1464_v51 = vpop.permute.xlu0 %1463  ;;  %v1319_v52 = vpop.permute.xlu1 %1318 }
 0x241   : > { %1341 = vst.msk [vmem:[#allocation4 + $0x10] sm:$0xff] %vm1338_vm14, %v1319_v52 }
 0x242   : > { %1570 = vrot.lane.b32.xlu0 %v1451_v47, %s2205_s14  ;;  %1672 = vrot.lane.b32.xlu1 %v1649_v50, %s2208_s26 }
 0x244   : > { %v1513_v53 = vpop.permute.xlu0 %1512  ;;  %v1368_v54 = vpop.permute.xlu1 %1367 }
 0x245   : > { %1390 = vst.msk [vmem:[#allocation4 + $0x10] sm:$0xff] %vm1387_vm0, %v1368_v54 }
 0x246   : > { %1426 = vrot.lane.b32.xlu0 %v1500_v49, %s2201_s20  ;;  %s1945_s20 = sshll.u32 %s1939_s24, 3 }
 0x247   : > { %p567_p8 = scmp.lt.s32.totalorder %s1945_s20, 15 }
 0x248   : > { %v1561_v55 = vpop.permute.xlu1 %1560  ;;  %v1462_v56 = vpop.permute.xlu0 %1461 }
 0x249   : > { %1486 = vst.msk [vmem:[#allocation4] sm:$0xff] %vm1485_vm1, %v1462_v56  ;;  %s2977_s20 = smov (!%p567_p8, %s1945_s20), 15 }
 0x24a   : > { %1619 = vrot.lane.b32.xlu0 %v1354_v41, %s2206_s16  ;;  %s1946_s14 = sshll.u32 %s2977_s20, 3 }
 0x24c   : > { %v1417_v57 = vpop.permute.xlu1 %1416 }
 0x24d   : > { %1439 = vst.msk [vmem:[#allocation4 + $0x10] sm:$0xff] %vm1436_vm15, %v1417_v57 }
 0x24e   : > { %1668 = vrot.lane.b32.xlu0 %v1500_v49, %s2208_s26 }
 0x250   : > { %v1610_v58 = vpop.permute.xlu1 %1609 }
 0x252   : > { %1670 = vrot.lane.b32.xlu0 %v1501_v46, %s2208_s26  ;;  %s2911_s26 = scalar_lea.vmem %s2972_s6, %s1946_s14 }
 0x254   : > { %v1659_v60 = vpop.permute.xlu1 %1658 }
 0x256   : > { %1162 = vrot.lane.b32.xlu0 %v2013_v59, %s2196_s15  ;;  %s2209_s15 = smov 120  }
 0x258   : > { %v1317_v61 = vpop.permute.xlu1 %1316 }
 0x259   : > { %1340 = vst.msk [vmem:[#allocation4 + $0x8] sm:$0xff] %vm1338_vm14, %v1317_v61 }
 0x25c   : > { %v1366_v62 = vpop.permute.xlu1 %1365 }
 0x25d   : > { %1389 = vst.msk [vmem:[#allocation4 + $0x8] sm:$0xff] %vm1387_vm0, %v1366_v62 }
 0x260   : > { %v1415_v63 = vpop.permute.xlu1 %1414  ;;  %v1323_v1 = vpop.permute.xlu0 %1322 }
 0x261   : > { %1438 = vst.msk [vmem:[#allocation4 + $0x8] sm:$0xff] %vm1436_vm15, %v1415_v63 }
 0x262   : > { %1343 = vst.msk [vmem:[#allocation4 + $0x20] sm:$0xff] %vm1338_vm14, %v1323_v1 }
 0x263   : > { %1487 = vst.msk [vmem:[#allocation4 + $0x8] sm:$0xff] %vm1485_vm1, %v1464_v51 }
 0x264   : > { %1536 = vst.msk [vmem:[#allocation4 + $0x8] sm:$0xff] %vm1534_vm2, %v1513_v53  ;;  %v1511_v3 = vpop.permute.xlu1 %1510  ;;  %v1517_v4 = vpop.permute.xlu0 %1516 }
 0x265   : > { %1535 = vst.msk [vmem:[#allocation4] sm:$0xff] %vm1534_vm2, %v1511_v3 }
 0x266   : > { %1585 = vst.msk [vmem:[#allocation4] sm:$0xff] %vm1584_vm3, %v1561_v55 }
 0x267   : > { %1634 = vst.msk [vmem:[#allocation4] sm:$0xff] %vm1633_vm4, %v1610_v58 }
 0x268   : > { %1683 = vst.msk [vmem:[#allocation4] sm:$0xff] %vm1682_vm5, %v1659_v60  ;;  %v1468_v5 = vpop.permute.xlu1 %1467  ;;  %v1321_v6 = vpop.permute.xlu0 %1320 }
 0x269   : > { %1342 = vst.msk [vmem:[#allocation4 + $0x18] sm:$0xff] %vm1338_vm14, %v1321_v6 }
 0x26c   : > { %v1372_v7 = vpop.permute.xlu1 %1371  ;;  %v1370_v8 = vpop.permute.xlu0 %1369 }
 0x26d   : > { %1392 = vst.msk [vmem:[#allocation4 + $0x20] sm:$0xff] %vm1387_vm0, %v1372_v7  ;;  %1391 = vst.msk [vmem:[#allocation4 + $0x18] sm:$0xff] %vm1387_vm0, %v1370_v8 }
 0x26f   : > { %v1691_v9 = vld [vmem:[#allocation4] sm:$0xff] }
 0x270   : > { %2095 = vmatprep.mubr.msk.f32.mxu1 %vm1715_vm6, %v1691_v9  ;;  %v1565_v10 = vpop.permute.xlu1 %1564  ;;  %v1563_v11 = vpop.permute.xlu0 %1562 }
 0x271   : > { %1586 = vst.msk [vmem:[#allocation4 + $0x8] sm:$0xff] %vm1584_vm3, %v1563_v11 }
 0x274   : > { %v1421_v12 = vpop.permute.xlu1 %1420  ;;  %v1419_v13 = vpop.permute.xlu0 %1418 }
 0x275   : > { %1441 = vst.msk [vmem:[#allocation4 + $0x20] sm:$0xff] %vm1436_vm15, %v1421_v12  ;;  %1440 = vst.msk [vmem:[#allocation4 + $0x18] sm:$0xff] %vm1436_vm15, %v1419_v13 }
 0x276   : > { %1489 = vst.msk [vmem:[#allocation4 + $0x18] sm:$0xff] %vm1485_vm1, %v1468_v5 }
 0x277   : > { %1538 = vst.msk [vmem:[#allocation4 + $0x18] sm:$0xff] %vm1534_vm2, %v1517_v4 }
 0x278   : > { %v1614_v14 = vpop.permute.xlu1 %1613  ;;  %v1612_v15 = vpop.permute.xlu0 %1611 }
 0x279   : > { %1635 = vst.msk [vmem:[#allocation4 + $0x8] sm:$0xff] %vm1633_vm4, %v1612_v15 }
 0x27c   : > { %v1663_v16 = vpop.permute.xlu1 %1662  ;;  %v1515_v17 = vpop.permute.xlu0 %1514 }
 0x280   : > { %v1466_v18 = vpop.permute.xlu1 %1465  ;;  %v1327_v21 = vpop.permute.xlu0 %1326 }
 0x281   : > { %1488 = vst.msk [vmem:[#allocation4 + $0x10] sm:$0xff] %vm1485_vm1, %v1466_v18 }
 0x282   : > { %1345 = vst.msk [vmem:[#allocation4 + $0x30] sm:$0xff] %vm1338_vm14, %v1327_v21 }
 0x283   : > { %1537 = vst.msk [vmem:[#allocation4 + $0x10] sm:$0xff] %vm1534_vm2, %v1515_v17 }
 0x284   : > { %1587 = vst.msk [vmem:[#allocation4 + $0x10] sm:$0xff] %vm1584_vm3, %v1565_v10  ;;  %v1661_v24 = vpop.permute.xlu1 %1660  ;;  %v1521_v26 = vpop.permute.xlu0 %1520  ;;  %v2014_v10 = vld [vmem:[%s2970_s4] ss:$0 sm:$0xff] }
 0x285   : > { %1636 = vst.msk [vmem:[#allocation4 + $0x10] sm:$0xff] %vm1633_vm4, %v1614_v14 }
 0x286   : > { %1685 = vst.msk [vmem:[#allocation4 + $0x10] sm:$0xff] %vm1682_vm5, %v1663_v16  ;;  %1684 = vst.msk [vmem:[#allocation4 + $0x8] sm:$0xff] %vm1682_vm5, %v1661_v24 }
 0x288   : > { %v1472_v27 = vpop.permute.xlu1 %1471  ;;  %v1325_v28 = vpop.permute.xlu0 %1324 }
 0x289   : > { %1344 = vst.msk [vmem:[#allocation4 + $0x28] sm:$0xff] %vm1338_vm14, %v1325_v28 }
 0x28c   : > { %v1376_v29 = vpop.permute.xlu1 %1375  ;;  %v1374_v30 = vpop.permute.xlu0 %1373 }
 0x28d   : > { %v1692_v31 = vld [vmem:[#allocation4 + $0x8] sm:$0xff]  ;;  %v1693_v32 = vld [vmem:[#allocation4 + $0x10] sm:$0xff]  ;;  %1394 = vst.msk [vmem:[#allocation4 + $0x30] sm:$0xff] %vm1387_vm0, %v1376_v29  ;;  %1393 = vst.msk [vmem:[#allocation4 + $0x28] sm:$0xff] %vm1387_vm0, %v1374_v30 }
 0x28e   : > { %2096 = vmatmul.mubr.msk.f32.vlgmr.msra.gmra.mrb[0].mxu1 %vm1715_vm6, %v1692_v31 }
 0x28f   : > { %2098 = vmatprep.mubr.msk.f32.mxu1 %vm1715_vm6, %v1693_v32 }
 0x290   : > { %v1569_v33 = vpop.permute.xlu1 %1568  ;;  %v1567_v34 = vpop.permute.xlu0 %1566 }
 0x291   : > { %1588 = vst.msk [vmem:[#allocation4 + $0x18] sm:$0xff] %vm1584_vm3, %v1567_v34 }
 0x294   : > { %v1425_v19 = vpop.permute.xlu1 %1424  ;;  %v1423_v35 = vpop.permute.xlu0 %1422 }
 0x295   : > { %1443 = vst.msk [vmem:[#allocation4 + $0x30] sm:$0xff] %vm1436_vm15, %v1425_v19  ;;  %1442 = vst.msk [vmem:[#allocation4 + $0x28] sm:$0xff] %vm1436_vm15, %v1423_v35 }
 0x296   : > { %1491 = vst.msk [vmem:[#allocation4 + $0x28] sm:$0xff] %vm1485_vm1, %v1472_v27 }
 0x297   : > { %1540 = vst.msk [vmem:[#allocation4 + $0x28] sm:$0xff] %vm1534_vm2, %v1521_v26 }
 0x298   : > { %v1618_v36 = vpop.permute.xlu1 %1617  ;;  %v1616_v37 = vpop.permute.xlu0 %1615 }
 0x299   : > { %1637 = vst.msk [vmem:[#allocation4 + $0x18] sm:$0xff] %vm1633_vm4, %v1616_v37 }
 0x29c   : > { %v1667_v38 = vpop.permute.xlu1 %1666  ;;  %v1519_v39 = vpop.permute.xlu0 %1518 }
 0x2a0   : > { %v1470_v41 = vpop.permute.xlu1 %1469  ;;  %v1476_v43 = vpop.permute.xlu0 %1475 }
 0x2a1   : > { %1490 = vst.msk [vmem:[#allocation4 + $0x20] sm:$0xff] %vm1485_vm1, %v1470_v41 }
 0x2a2   : > { %1539 = vst.msk [vmem:[#allocation4 + $0x20] sm:$0xff] %vm1534_vm2, %v1519_v39 }
 0x2a3   : > { %1589 = vst.msk [vmem:[#allocation4 + $0x20] sm:$0xff] %vm1584_vm3, %v1569_v33 }
 0x2a4   : > { %1638 = vst.msk [vmem:[#allocation4 + $0x20] sm:$0xff] %vm1633_vm4, %v1618_v36  ;;  %v1665_v44 = vpop.permute.xlu1 %1664  ;;  %v1573_v46 = vpop.permute.xlu0 %1572 }
 0x2a5   : > { %1687 = vst.msk [vmem:[#allocation4 + $0x20] sm:$0xff] %vm1682_vm5, %v1667_v38  ;;  %1686 = vst.msk [vmem:[#allocation4 + $0x18] sm:$0xff] %vm1682_vm5, %v1665_v44 }
 0x2a8   : > { %v1525_v47 = vpop.permute.xlu1 %1524  ;;  %v1622_v49 = vpop.permute.xlu0 %1621 }
 0x2ac   : > { %v1474_v50 = vpop.permute.xlu1 %1473  ;;  %v1329_v51 = vpop.permute.xlu0 %1328  ;;  %v1694_v52 = vld [vmem:[#allocation4 + $0x18] sm:$0xff]  ;;  %v1695_v53 = vld [vmem:[#allocation4 + $0x20] sm:$0xff] }
 0x2ad   : > { %1492 = vst.msk [vmem:[#allocation4 + $0x30] sm:$0xff] %vm1485_vm1, %v1474_v50  ;;  %2099 = vmatmul.mubr.msk.f32.gmra.mrb[2].mxu1 %vm1715_vm6, %v1694_v52 }
 0x2ae   : > { %1346 = vst.msk [vmem:[#allocation4 + $0x38] sm:$0xff] %vm1338_vm14, %v1329_v51  ;;  %2101 = vmatprep.mubr.msk.f32.mxu1 %vm1715_vm6, %v1695_v53 }
 0x2b0   : > { %v1523_v54 = vpop.permute.xlu1 %1522  ;;  %v1378_v55 = vpop.permute.xlu0 %1377 }
 0x2b1   : > { %1541 = vst.msk [vmem:[#allocation4 + $0x30] sm:$0xff] %vm1534_vm2, %v1523_v54 }
 0x2b2   : > { %1395 = vst.msk [vmem:[#allocation4 + $0x38] sm:$0xff] %vm1387_vm0, %v1378_v55 }
 0x2b3   : > { %1591 = vst.msk [vmem:[#allocation4 + $0x30] sm:$0xff] %vm1584_vm3, %v1573_v46 }
 0x2b4   : > { %1640 = vst.msk [vmem:[#allocation4 + $0x30] sm:$0xff] %vm1633_vm4, %v1622_v49  ;;  %v1571_v56 = vpop.permute.xlu0 %1570  ;;  %v1673_v58 = vpop.permute.xlu1 %1672 }
 0x2b5   : > { %1590 = vst.msk [vmem:[#allocation4 + $0x28] sm:$0xff] %vm1584_vm3, %v1571_v56 }
 0x2b8   : > { %v1427_v57 = vpop.permute.xlu0 %1426 }
 0x2b9   : > { %1444 = vst.msk [vmem:[#allocation4 + $0x38] sm:$0xff] %vm1436_vm15, %v1427_v57 }
 0x2ba   : > { %1493 = vst.msk [vmem:[#allocation4 + $0x38] sm:$0xff] %vm1485_vm1, %v1476_v43 }
 0x2bb   : > { %1542 = vst.msk [vmem:[#allocation4 + $0x38] sm:$0xff] %vm1534_vm2, %v1525_v47 }
 0x2bc   : > { %1592 = vst.msk [vmem:[#allocation4 + $0x38] sm:$0xff] %vm1584_vm3, %v2807_v45  ;;  %v1620_v59 = vpop.permute.xlu0 %1619 }
 0x2bd   : > { %1639 = vst.msk [vmem:[#allocation4 + $0x28] sm:$0xff] %vm1633_vm4, %v1620_v59  ;;  %1641 = vst.msk [vmem:[#allocation4 + $0x38] sm:$0xff] %vm1633_vm4, %v2813_v48 }
 0x2be   : > { %1690 = vst.msk [vmem:[#allocation4 + $0x38] sm:$0xff] %vm1682_vm5, %v1673_v58 }
 0x2c0   : > { %v1669_v60 = vpop.permute.xlu0 %1668 }
 0x2c1   : > { %1688 = vst.msk [vmem:[#allocation4 + $0x28] sm:$0xff] %vm1682_vm5, %v1669_v60 }
 0x2c4   : > { %v1671_v61 = vpop.permute.xlu0 %1670 }
 0x2c5   : > { %1689 = vst.msk [vmem:[#allocation4 + $0x30] sm:$0xff] %vm1682_vm5, %v1671_v61  ;;  %v1698_v48 = vld [vmem:[#allocation4 + $0x38] sm:$0xff] }
 0x2c8   : > { %v1163_v62 = vpop.permute.xlu0 %1162  ;;  %v1696_v63 = vld [vmem:[#allocation4 + $0x28] sm:$0xff] }
 0x2c9   : > { %2102 = vmatmul.mubr.msk.f32.gmra.mrb[4].mxu1 %vm1715_vm6, %v1696_v63  ;;  %v1166_v45 = vadd.f32 %v2658_v20, %v1163_v62  ;;  %v1165_v1 = vadd.f32 %v1163_v62, %v2662_v22  ;;  %v1168_v4 = vadd.f32 %v2687_v40, %v1163_v62  ;;  %v1167_v5 = vadd.f32 %v1163_v62, %v2691_v42 }
 0x2ca   : > { %v1170_v20 = vadd.f32 %v2730_v0, %v1163_v62  ;;  %v1169_v22 = vadd.f32 %v1163_v62, %v2734_v2  ;;  %v1172_v6 = vadd.f32 %v2767_v23, %v1163_v62  ;;  %v1171_v7 = vadd.f32 %v1163_v62, %v2771_v25 }
 0x2cb   : > { %1183 = vrot.lane.b32.xlu0 %v1166_v45, %s2209_s15  ;;  %1181 = vrot.lane.b32.xlu1 %v1165_v1, %s2209_s15 }
 0x2cc   : > { %v1697_v3 = vld [vmem:[#allocation4 + $0x30] sm:$0xff] }
 0x2cd   : > { %2104 = vmatprep.mubr.msk.f32.mxu1 %vm1715_vm6, %v1697_v3 }
 0x2ce   : > { %2105 = vmatmul.mubr.msk.f32.gmra.mrb[6].mxu1 %vm1715_vm6, %v1698_v48 }
 0x2cf   : > { %1187 = vrot.lane.b32.xlu0 %v1168_v4, %s2209_s15  ;;  %1185 = vrot.lane.b32.xlu1 %v1167_v5, %s2209_s15 }
 0x2d3   : > { %1191 = vrot.lane.b32.xlu0 %v1170_v20, %s2209_s15  ;;  %1189 = vrot.lane.b32.xlu1 %v1169_v22, %s2209_s15 }
 0x2d7   : > { %1195 = vrot.lane.b32.xlu0 %v1172_v6, %s2209_s15  ;;  %1193 = vrot.lane.b32.xlu1 %v1171_v7, %s2209_s15 }
 0x33d   : > { %v1184_v40 = vpop.permute.xlu0 %1183  ;;  %v1182_v42 = vpop.permute.xlu1 %1181 }
 0x33e   : > { %1207 = vst.msk [vmem:[%s2911_s26 + $0x8] sm:$0xff] %vm1205_vm12, %v1184_v40  ;;  %1206 = vst.msk [vmem:[%s2911_s26] sm:$0xff] %vm1205_vm12, %v1182_v42 }
 0x341   : > { %v1188_v0 = vpop.permute.xlu0 %1187  ;;  %v1186_v2 = vpop.permute.xlu1 %1185 }
 0x342   : > { %1209 = vst.msk [vmem:[%s2911_s26 + $0x18] sm:$0xff] %vm1205_vm12, %v1188_v0  ;;  %1208 = vst.msk [vmem:[%s2911_s26 + $0x10] sm:$0xff] %vm1205_vm12, %v1186_v2 }
 0x345   : > { %v1192_v23 = vpop.permute.xlu0 %1191  ;;  %v1190_v25 = vpop.permute.xlu1 %1189  ;;  %v1846_v14 = vld [vmem:[%s2911_s26 + $0x8] sm:$0xff]  ;;  %v1845_v17 = vld [vmem:[%s2911_s26] sm:$0xff] }
 0x346   : > { %1211 = vst.msk [vmem:[%s2911_s26 + $0x28] sm:$0xff] %vm1205_vm12, %v1192_v23  ;;  %1210 = vst.msk [vmem:[%s2911_s26 + $0x20] sm:$0xff] %vm1205_vm12, %v1190_v25 }
 0x349   : > { %v1196_v8 = vpop.permute.xlu0 %1195  ;;  %v1194_v9 = vpop.permute.xlu1 %1193  ;;  %v1848_v29 = vld [vmem:[%s2911_s26 + $0x18] sm:$0xff]  ;;  %v1847_v32 = vld [vmem:[%s2911_s26 + $0x10] sm:$0xff] }
 0x34a   : > { %1213 = vst.msk [vmem:[%s2911_s26 + $0x38] sm:$0xff] %vm1205_vm12, %v1196_v8  ;;  %1212 = vst.msk [vmem:[%s2911_s26 + $0x30] sm:$0xff] %vm1205_vm12, %v1194_v9 }
 0x34d   : > { %v1850_v38 = vld [vmem:[%s2911_s26 + $0x28] sm:$0xff]  ;;  %v1849_v43 = vld [vmem:[%s2911_s26 + $0x20] sm:$0xff] }
 0x351   : > { %v1852_v52 = vld [vmem:[%s2911_s26 + $0x38] sm:$0xff]  ;;  %v1851_v55 = vld [vmem:[%s2911_s26 + $0x30] sm:$0xff] }
 0x361   : > { %v2097_v11 = vpop.f32.mrb[0].mxu1 }
 0x362   : > { %v1812_v12 = vadd.f32 %v2097_v11, %v2014_v10  ;;  %v1806_v13 = vpop.f32.mrb[1].mxu1 }
 0x363   : > { %v1807_v15 = vadd.f32 %v2014_v10, %v1806_v13 }
 0x364   : > { %v1854_v16 = vadd.f32 %v1846_v14, %v1812_v12 }
 0x365   : > { %v1853_v18 = vadd.f32 %v1845_v17, %v1807_v15 }
 0x366   : > { %v1862_v21 = vmax.f32 %v1854_v16, 0.0 }
 0x367   : > { %v1861_v24 = vmax.f32 %v1853_v18, 0.0 }
 0x368   : > { %1870 = vst.msk [vmem:[%s2911_s26 + $0x8] sm:$0xff] %vm1205_vm12, %v1862_v21 }
 0x369   : > { %1869 = vst.msk [vmem:[%s2911_s26] sm:$0xff] %vm1205_vm12, %v1861_v24 }
 0x380   : > { %v2100_v26 = vpop.f32.mrb[2].mxu1 }
 0x381   : > { %v1822_v27 = vadd.f32 %v2100_v26, %v2014_v10  ;;  %v1816_v28 = vpop.f32.mrb[3].mxu1 }
 0x382   : > { %v1817_v30 = vadd.f32 %v2014_v10, %v1816_v28 }
 0x383   : > { %v1856_v31 = vadd.f32 %v1848_v29, %v1822_v27 }
 0x384   : > { %v1855_v33 = vadd.f32 %v1847_v32, %v1817_v30 }
 0x385   : > { %v1864_v34 = vmax.f32 %v1856_v31, 0.0 }
 0x386   : > { %v1863_v19 = vmax.f32 %v1855_v33, 0.0 }
 0x387   : > { %1872 = vst.msk [vmem:[%s2911_s26 + $0x18] sm:$0xff] %vm1205_vm12, %v1864_v34 }
 0x388   : > { %1871 = vst.msk [vmem:[%s2911_s26 + $0x10] sm:$0xff] %vm1205_vm12, %v1863_v19 }
 0x39c   : > { %v2103_v35 = vpop.f32.mrb[4].mxu1 }
 0x39d   : > { %v1832_v36 = vadd.f32 %v2103_v35, %v2014_v10  ;;  %v1826_v37 = vpop.f32.mrb[5].mxu1 }
 0x39e   : > { %v1827_v39 = vadd.f32 %v2014_v10, %v1826_v37 }
 0x39f   : > { %v1858_v41 = vadd.f32 %v1850_v38, %v1832_v36 }
 0x3a0   : > { %v1857_v44 = vadd.f32 %v1849_v43, %v1827_v39 }
 0x3a1   : > { %v1866_v46 = vmax.f32 %v1858_v41, 0.0  ;;  %v2106_v47 = vpop.f32.mrb[6].mxu1 }
 0x3a2   : > { %v1865_v49 = vmax.f32 %v1857_v44, 0.0  ;;  %v1842_v50 = vadd.f32 %v2106_v47, %v2014_v10  ;;  %v1836_v51 = vpop.f32.mrb[7].mxu1 }
 0x3a3   : > { %1874 = vst.msk [vmem:[%s2911_s26 + $0x28] sm:$0xff] %vm1205_vm12, %v1866_v46  ;;  %v1837_v53 = vadd.f32 %v2014_v10, %v1836_v51 }
 0x3a4   : > { %1873 = vst.msk [vmem:[%s2911_s26 + $0x20] sm:$0xff] %vm1205_vm12, %v1865_v49  ;;  %v1860_v54 = vadd.f32 %v1852_v52, %v1842_v50 }
 0x3a5   : > { %v1859_v56 = vadd.f32 %v1851_v55, %v1837_v53 }
 0x3a6   : > { %v1868_v57 = vmax.f32 %v1860_v54, 0.0 }
 0x3a7   : > { %v1867_v58 = vmax.f32 %v1859_v56, 0.0 }
 0x3a8   : > { %1876 = vst.msk [vmem:[%s2911_s26 + $0x38] sm:$0xff] %vm1205_vm12, %v1868_v57 }
 0x3a9   : > { %1875 = vst.msk [vmem:[%s2911_s26 + $0x30] sm:$0xff] %vm1205_vm12, %v1867_v58 }
 0x3aa PF: > { %p13_p9 = scmp.ge.s32.totalorder %s2262_s25, 4   ;;  %s2973_s21 = smov %s2190_s22 }
 0x3ab   : > { %s2974_s22 = smov %s2271_s28  ;;  %s2975_s23 = smov %s2262_s25 }
 0x3ac   :  { %15 = sbr.rel (!%p13_p9) target bundleno = 2 (0x2), region = 124 }

</bundles_post_ra>
